<compile_context>
chip_gen: v6e
topology: v6e:2x2x1
jax: 0.10.0
libtpu: 0.0.40
codegen_flags: <defaults>
</compile_context>

<pallas_src>
import numpy as np
import jax
import jax.numpy as jnp
from jax import lax
from jax.experimental import pallas as pl
from jax.experimental.pallas import tpu as pltpu

C = 4            # per-head channel dim ("c" in the PyTorch module)
HEADS = 8
L = 16           # sequence length
HC = C * HEADS   # 32
QKV = 3 * HC     # 96
KSIZES = (3, 15)
NTAPS = sum(KSIZES)   # 18


# ----------------------------- Pallas kernel ------------------------------ #

def _ddsc_mha_kernel(x_ref, wp_ref, p16_ref, p32_ref, p128_ref, p288_ref, o_ref):
    f32 = jnp.float32
    x = x_ref[0]                                            # (C, L)

    # Unpack the packed constant slabs (static, sublane-tile-aligned slices).
    s_all  = p288_ref[0:L, :]                               # (L, NTAPS*L)   = (16, 288)
    slab   = p288_ref[L:L + QKV, :]                         # (QKV, NTAPS*L) = (96, 288)
    tile_v = p16_ref[0:HEADS * L, :]                        # (H*L, L)       = (128, 16)
    summat = p16_ref[HEADS * L:HEADS * L + NTAPS * L, :]    # (NTAPS*L, L)   = (288, 16)
    bias   = p16_ref[HEADS * L + NTAPS * L:
                     HEADS * L + NTAPS * L + C, :]          # (C, L)         = (4, 16)
    mask_v = p32_ref[0:HEADS * L, :]                        # (H*L, HC)      = (128, 32)
    wu     = p32_ref[HEADS * L:HEADS * L + C, :]            # (C, HC)        = (4, 32)
    tile_h = p128_ref[0:L, :]                               # (L, H*L)       = (16, 128)
    mask_h = p128_ref[L:L + HC, :]                          # (HC, H*L)      = (32, 128)
    bsum   = p128_ref[L + HC:L + HC + HEADS * L, :]         # (H*L, H*L)     = (128, 128)

    # ---- fused Q/K/V dynamic depth-separable conv: 3 matmuls + 1 mul ----
    y   = jnp.dot(wp_ref[...], x, preferred_element_type=f32)      # (96, 16) pointwise
    ys  = jnp.dot(y, s_all, preferred_element_type=f32)            # (96, 288) all taps, lane-dense
    qkv = jnp.dot(ys * slab, summat, preferred_element_type=f32)   # (96, 16) gated tap sum

    q = qkv[0:HC, :]                 # (32, 16)
    k = qkv[HC:2 * HC, :]            # (32, 16), already carries the 1/sqrt(C) scale
    v = qkv[2 * HC:QKV, :]           # (32, 16)

    # ---- attention: all 8 heads via block-diagonal matmuls ----
    # kbd[h*L + kk, h*C + c] = k[h*C + c, kk]   (transpose absorbed by dot_general)
    kbd = lax.dot_general(tile_v, k, (((1,), (1,)), ((), ())),
                          preferred_element_type=f32) * mask_v     # (128, 32)
    sc = jnp.dot(kbd, q, preferred_element_type=f32)               # (128, 16) scores

    # softmax over keys (the 16-row block of each head). The per-column max is
    # a constant shift within every block, so the softmax result is unchanged.
    m = jnp.max(sc, axis=0, keepdims=True)                         # (1, 16)
    e = jnp.exp(sc - m)
    denom = jnp.dot(bsum, e, preferred_element_type=f32)           # per-head sum, broadcast
    attn = e * pl.reciprocal(denom)                                # (128, 16)

    # vsc[h*C + c, h*L + kk] = v[h*C + c, kk]; cat = concat_h(V_h @ attn_h)
    vsc = jnp.dot(v, tile_h, preferred_element_type=f32) * mask_h  # (32, 128)
    cat = jnp.dot(vsc, attn, preferred_element_type=f32)           # (32, 16)

    # unify_heads 1x1 conv + bias
    o_ref[0] = jnp.dot(wu, cat, preferred_element_type=f32) + bias


def ddsc_mha(x, operands):
    B = x.shape[0]

    def full_spec(a):
        nd = a.ndim
        return pl.BlockSpec(a.shape, lambda i, _nd=nd: (0,) * _nd)

    return pl.pallas_call(
        _ddsc_mha_kernel,
        out_shape=jax.ShapeDtypeStruct((B, C, L), jnp.float32),
        grid=(B,),
        in_specs=[pl.BlockSpec((1, C, L), lambda i: (i, 0, 0))]
                 + [full_spec(w) for w in operands],
        out_specs=pl.BlockSpec((1, C, L), lambda i: (i, 0, 0)),
        compiler_params=pltpu.CompilerParams(dimension_semantics=("parallel",)),
    )(x, *operands)


# ----------------------- host-side operator folding ------------------------ #

def build_operands(raw):
    """Fold gate softmax, attention scale and all layout constants host-side."""
    f32 = np.float32
    gq = jax.nn.softmax(raw['gq'])
    gk = jax.nn.softmax(raw['gk'])
    gv = jax.nn.softmax(raw['gv'])
    scale = 1.0 / np.sqrt(C)          # (q / c^0.25) . (k / c^0.25) folded into K branch

    # fused pointwise weights (Q, K*scale, V): (96, C)
    wp_all = jnp.concatenate([raw['wq_p'], raw['wk_p'] * scale, raw['wv_p']], axis=0)

    # effective depthwise weights with the gate softmax folded in: (96, NTAPS)
    def dw(d0, d1, g):
        return jnp.concatenate([d0 * g[0], d1 * g[1]], axis=1)
    wd_all = jnp.concatenate([dw(raw['wq_d0'], raw['wq_d1'], gq),
                              dw(raw['wk_d0'], raw['wk_d1'], gk),
                              dw(raw['wv_d0'], raw['wv_d1'], gv)], axis=0)
    slab = jnp.repeat(wd_all, L, axis=1)                           # (96, NTAPS*L)

    # stacked zero-padded shift matrices (one per tap) and the tap-sum matrix
    shifts = []
    for ksz in KSIZES:
        pad = (ksz - 1) // 2
        for j in range(ksz):
            off = j - pad
            m = np.zeros((L, L), f32)
            for t in range(L):
                if 0 <= t + off < L:
                    m[t + off, t] = 1.0                            # (y @ m)[:, t] == y[:, t+off]
            shifts.append(m)
    s_all = np.concatenate(shifts, axis=1)                         # (16, 288)
    summat = np.tile(np.eye(L, dtype=f32), (NTAPS, 1))             # (288, 16)

    # block-diagonal layout constants for the multi-head attention matmuls
    eye_l = np.eye(L, dtype=f32)
    eye_h = np.eye(HEADS, dtype=f32)
    tile_v = np.tile(eye_l, (HEADS, 1))                            # (128, 16)
    tile_h = np.tile(eye_l, (1, HEADS))                            # (16, 128)
    mask_v = np.kron(eye_h, np.ones((L, C), f32))                  # (128, 32)
    mask_h = np.kron(eye_h, np.ones((C, L), f32))                  # (32, 128)
    bsum   = np.kron(eye_h, np.ones((L, L), f32))                  # (128, 128)

    bias = jnp.broadcast_to(raw['bu'], (C, L))                     # (4, 16)

    # pack constants by lane width to cut the number of kernel inputs to 5
    pack16  = jnp.concatenate([jnp.asarray(tile_v), jnp.asarray(summat), bias], axis=0)   # (420, 16)
    pack32  = jnp.concatenate([jnp.asarray(mask_v), raw['wu']], axis=0)                   # (132, 32)
    pack128 = jnp.concatenate([jnp.asarray(tile_h), jnp.asarray(mask_h),
                               jnp.asarray(bsum)], axis=0)                                # (176, 128)
    pack288 = jnp.concatenate([jnp.asarray(s_all), slab], axis=0)                         # (112, 288)
    return (wp_all, pack16, pack32, pack128, pack288)


# --------------------------- pure-JAX reference ---------------------------- #

def _dds_conv_ref(x, wp, wds, gate):
    y = jnp.einsum('oc,bcl->bol', wp, x)
    g = jax.nn.softmax(gate)
    total = jnp.zeros_like(y)
    Lx = x.shape[-1]
    for gi, wd in zip(list(g), wds):
        K = wd.shape[1]
        pad = (K - 1) // 2
        yp = jnp.pad(y, ((0, 0), (0, 0), (pad, pad)))
        acc = jnp.zeros_like(y)
        for j in range(K):
            acc = acc + wd[None, :, j:j + 1] * yp[:, :, j:j + Lx]
        total = total + gi * acc
    return total


def reference(q, p):
    B = q.shape[0]
    Q = _dds_conv_ref(q, p['wq_p'], [p['wq_d0'], p['wq_d1']], p['gq'])
    Kt = _dds_conv_ref(q, p['wk_p'], [p['wk_d0'], p['wk_d1']], p['gk'])
    V = _dds_conv_ref(q, p['wv_p'], [p['wv_d0'], p['wv_d1']], p['gv'])
    s = C ** 0.25
    Q = Q.reshape(B * HEADS, C, L) / s
    Kt = Kt.reshape(B * HEADS, C, L) / s
    V = V.reshape(B * HEADS, C, L)
    dot = jnp.einsum('bck,bcq->bkq', Kt, Q)
    attn = jax.nn.softmax(dot, axis=1)                     # softmax over keys
    out = jnp.einsum('bck,bkq->bcq', V, attn).reshape(B, HC, L)
    return jnp.einsum('oc,bcl->bol', p['wu'], out) + p['bu'][None, :, :]


# --------------------------------- main ------------------------------------ #

if __name__ == "__main__":
    key = jax.random.PRNGKey(0)
    ks = jax.random.split(key, 16)

    def init(k, shape, scale=0.3):
        return (scale * jax.random.normal(k, shape)).astype(jnp.float32)

    raw = {
        'wq_p': init(ks[0], (HC, C)),
        'wq_d0': init(ks[1], (HC, KSIZES[0])),
        'wq_d1': init(ks[2], (HC, KSIZES[1])),
        'gq': init(ks[3], (2,), 1.0),
        'wk_p': init(ks[4], (HC, C)),
        'wk_d0': init(ks[5], (HC, KSIZES[0])),
        'wk_d1': init(ks[6], (HC, KSIZES[1])),
        'gk': init(ks[7], (2,), 1.0),
        'wv_p': init(ks[8], (HC, C)),
        'wv_d0': init(ks[9], (HC, KSIZES[0])),
        'wv_d1': init(ks[10], (HC, KSIZES[1])),
        'gv': init(ks[11], (2,), 1.0),
        'wu': init(ks[12], (C, HC)),
        'bu': init(ks[13], (C, 1)),
    }
    q = init(ks[14], (2, C, L), scale=1.0)

    operands = build_operands(raw)

    out = ddsc_mha(q, operands)
    out = jax.block_until_ready(out)

    ref = reference(q, raw)
    np.testing.assert_allclose(np.asarray(out), np.asarray(ref),
                               rtol=1e-4, atol=1e-4)

    # TODO(synk): self.attn caching (save_attn/get_attn) is module state with no
    # return value; attention weights stay kernel-internal and are not exposed.
    print("KERNEL_OK")
</pallas_src>

<mosaic_0001>
module attributes {stable_mosaic.version = 11 : i64} {
  func.func @_ddsc_mha_kernel(%arg0: i32, %arg1: memref<1x4x16xf32, #tpu.memory_space<vmem>>, %arg2: memref<96x4xf32, #tpu.memory_space<vmem>>, %arg3: memref<420x16xf32, #tpu.memory_space<vmem>>, %arg4: memref<132x32xf32, #tpu.memory_space<vmem>>, %arg5: memref<176x128xf32, #tpu.memory_space<vmem>>, %arg6: memref<112x288xf32, #tpu.memory_space<vmem>>, %arg7: memref<1x4x16xf32, #tpu.memory_space<vmem>>) attributes {dimension_semantics = [#tpu.dimension_semantics<parallel>], iteration_bounds = array<i64: 2>, scalar_prefetch = 0 : i64, scratch_operands = 0 : i64, tpu.core_type = #tpu.core_type<tc>, window_params = [{transform_indices = @transform_0, window_bounds = array<i64: 1, 4, 16>}, {pipeline_mode = #tpu.pipeline_mode<synchronous>, transform_indices = @transform_1, window_bounds = array<i64: 96, 4>}, {pipeline_mode = #tpu.pipeline_mode<synchronous>, transform_indices = @transform_2, window_bounds = array<i64: 420, 16>}, {pipeline_mode = #tpu.pipeline_mode<synchronous>, transform_indices = @transform_3, window_bounds = array<i64: 132, 32>}, {pipeline_mode = #tpu.pipeline_mode<synchronous>, transform_indices = @transform_4, window_bounds = array<i64: 176, 128>}, {pipeline_mode = #tpu.pipeline_mode<synchronous>, transform_indices = @transform_5, window_bounds = array<i64: 112, 288>}, {transform_indices = @transform_6, window_bounds = array<i64: 1, 4, 16>}]} {
    %c0 = arith.constant 0 : index
    %c0_0 = arith.constant 0 : index
    %c0_1 = arith.constant 0 : index
    %0 = vector.load %arg1[%c0, %c0_0, %c0_1] : memref<1x4x16xf32, #tpu.memory_space<vmem>>, vector<1x4x16xf32>
    %1 = vector.shape_cast %0 : vector<1x4x16xf32> to vector<4x16xf32>
    %c0_2 = arith.constant 0 : index
    %c0_3 = arith.constant 0 : index
    %2 = vector.load %arg6[%c0_2, %c0_3] : memref<112x288xf32, #tpu.memory_space<vmem>>, vector<16x288xf32>
    %c16 = arith.constant 16 : index
    %c0_4 = arith.constant 0 : index
    %3 = vector.load %arg6[%c16, %c0_4] : memref<112x288xf32, #tpu.memory_space<vmem>>, vector<96x288xf32>
    %c0_5 = arith.constant 0 : index
    %c0_6 = arith.constant 0 : index
    %4 = vector.load %arg3[%c0_5, %c0_6] : memref<420x16xf32, #tpu.memory_space<vmem>>, vector<128x16xf32>
    %c128 = arith.constant 128 : index
    %c0_7 = arith.constant 0 : index
    %5 = vector.load %arg3[%c128, %c0_7] : memref<420x16xf32, #tpu.memory_space<vmem>>, vector<288x16xf32>
    %c416 = arith.constant 416 : index
    %c0_8 = arith.constant 0 : index
    %6 = vector.load %arg3[%c416, %c0_8] : memref<420x16xf32, #tpu.memory_space<vmem>>, vector<4x16xf32>
    %c0_9 = arith.constant 0 : index
    %c0_10 = arith.constant 0 : index
    %7 = vector.load %arg4[%c0_9, %c0_10] : memref<132x32xf32, #tpu.memory_space<vmem>>, vector<128x32xf32>
    %c128_11 = arith.constant 128 : index
    %c0_12 = arith.constant 0 : index
    %8 = vector.load %arg4[%c128_11, %c0_12] : memref<132x32xf32, #tpu.memory_space<vmem>>, vector<4x32xf32>
    %c0_13 = arith.constant 0 : index
    %c0_14 = arith.constant 0 : index
    %9 = vector.load %arg5[%c0_13, %c0_14] : memref<176x128xf32, #tpu.memory_space<vmem>>, vector<16x128xf32>
    %c16_15 = arith.constant 16 : index
    %c0_16 = arith.constant 0 : index
    %10 = vector.load %arg5[%c16_15, %c0_16] : memref<176x128xf32, #tpu.memory_space<vmem>>, vector<32x128xf32>
    %c48 = arith.constant 48 : index
    %c0_17 = arith.constant 0 : index
    %11 = vector.load %arg5[%c48, %c0_17] : memref<176x128xf32, #tpu.memory_space<vmem>>, vector<128x128xf32>
    %c0_18 = arith.constant 0 : index
    %c0_19 = arith.constant 0 : index
    %12 = vector.load %arg2[%c0_18, %c0_19] : memref<96x4xf32, #tpu.memory_space<vmem>>, vector<96x4xf32>
    %cst = arith.constant dense<0.000000e+00> : vector<96x16xf32>
    %13 = tpu.matmul %12, %1, %cst {dimension_numbers = #tpu.dot_dimension_numbers<[1], [0], [0], [1], [0, 0, 1, 1], [], []>} : vector<96x4xf32>, vector<4x16xf32>, vector<96x16xf32> -> vector<96x16xf32>
    %cst_20 = arith.constant dense<0.000000e+00> : vector<96x288xf32>
    %14 = tpu.matmul %13, %2, %cst_20 {dimension_numbers = #tpu.dot_dimension_numbers<[1], [0], [0], [1], [0, 0, 1, 1], [], []>} : vector<96x16xf32>, vector<16x288xf32>, vector<96x288xf32> -> vector<96x288xf32>
    %15 = arith.mulf %14, %3 : vector<96x288xf32>
    %cst_21 = arith.constant dense<0.000000e+00> : vector<96x16xf32>
    %16 = tpu.matmul %15, %5, %cst_21 {dimension_numbers = #tpu.dot_dimension_numbers<[1], [0], [0], [1], [0, 0, 1, 1], [], []>} : vector<96x288xf32>, vector<288x16xf32>, vector<96x16xf32> -> vector<96x16xf32>
    %17 = vector.extract_strided_slice %16 {offsets = [0, 0], sizes = [32, 16], strides = [1, 1]} : vector<96x16xf32> to vector<32x16xf32>
    %18 = vector.extract_strided_slice %16 {offsets = [32, 0], sizes = [32, 16], strides = [1, 1]} : vector<96x16xf32> to vector<32x16xf32>
    %19 = vector.extract_strided_slice %16 {offsets = [64, 0], sizes = [32, 16], strides = [1, 1]} : vector<96x16xf32> to vector<32x16xf32>
    %cst_22 = arith.constant dense<0.000000e+00> : vector<128x32xf32>
    %20 = tpu.matmul %4, %18, %cst_22 {dimension_numbers = #tpu.dot_dimension_numbers<[1], [1], [0], [0], [0, 0, 1, 0], [], []>} : vector<128x16xf32>, vector<32x16xf32>, vector<128x32xf32> -> vector<128x32xf32>
    %21 = arith.mulf %20, %7 : vector<128x32xf32>
    %cst_23 = arith.constant dense<0.000000e+00> : vector<128x16xf32>
    %22 = tpu.matmul %21, %17, %cst_23 {dimension_numbers = #tpu.dot_dimension_numbers<[1], [0], [0], [1], [0, 0, 1, 1], [], []>} : vector<128x32xf32>, vector<32x16xf32>, vector<128x16xf32> -> vector<128x16xf32>
    %cst_24 = arith.constant dense<0xFF800000> : vector<16xf32>
    %23 = vector.multi_reduction <maximumf>, %22, %cst_24 [0] : vector<128x16xf32> to vector<16xf32>
    %24 = vector.shape_cast %23 : vector<16xf32> to vector<1x16xf32>
    %25 = vector.broadcast %24 : vector<1x16xf32> to vector<128x16xf32>
    %26 = arith.subf %22, %25 : vector<128x16xf32>
    %27 = math.exp %26 : vector<128x16xf32>
    %cst_25 = arith.constant dense<0.000000e+00> : vector<128x16xf32>
    %28 = tpu.matmul %11, %27, %cst_25 {dimension_numbers = #tpu.dot_dimension_numbers<[1], [0], [0], [1], [0, 0, 1, 1], [], []>} : vector<128x128xf32>, vector<128x16xf32>, vector<128x16xf32> -> vector<128x16xf32>
    %29 = tpu.reciprocal %28 : vector<128x16xf32> -> vector<128x16xf32>
    %30 = arith.mulf %27, %29 : vector<128x16xf32>
    %cst_26 = arith.constant dense<0.000000e+00> : vector<32x128xf32>
    %31 = tpu.matmul %19, %9, %cst_26 {dimension_numbers = #tpu.dot_dimension_numbers<[1], [0], [0], [1], [0, 0, 1, 1], [], []>} : vector<32x16xf32>, vector<16x128xf32>, vector<32x128xf32> -> vector<32x128xf32>
    %32 = arith.mulf %31, %10 : vector<32x128xf32>
    %cst_27 = arith.constant dense<0.000000e+00> : vector<32x16xf32>
    %33 = tpu.matmul %32, %30, %cst_27 {dimension_numbers = #tpu.dot_dimension_numbers<[1], [0], [0], [1], [0, 0, 1, 1], [], []>} : vector<32x128xf32>, vector<128x16xf32>, vector<32x16xf32> -> vector<32x16xf32>
    %cst_28 = arith.constant dense<0.000000e+00> : vector<4x16xf32>
    %34 = tpu.matmul %8, %33, %cst_28 {dimension_numbers = #tpu.dot_dimension_numbers<[1], [0], [0], [1], [0, 0, 1, 1], [], []>} : vector<4x32xf32>, vector<32x16xf32>, vector<4x16xf32> -> vector<4x16xf32>
    %35 = arith.addf %34, %6 : vector<4x16xf32>
    %c0_29 = arith.constant 0 : index
    %c0_30 = arith.constant 0 : index
    %c0_31 = arith.constant 0 : index
    %36 = vector.load %arg7[%c0_29, %c0_30, %c0_31] : memref<1x4x16xf32, #tpu.memory_space<vmem>>, vector<1x4x16xf32>
    %37 = vector.shape_cast %36 : vector<1x4x16xf32> to vector<4x16xf32>
    %38 = vector.shape_cast %35 : vector<4x16xf32> to vector<1x4x16xf32>
    tpu.vector_store %arg7[%c0_29, %c0_30, %c0_31], %38 {strides = array<i32>} : memref<1x4x16xf32, #tpu.memory_space<vmem>>, vector<1x4x16xf32>,
    return
  }
  func.func @transform_0(%arg0: i32) -> (i32, i32, i32) {
    %c0_i32 = arith.constant 0 : i32
    %c0_i32_0 = arith.constant 0 : i32
    %c0_i32_1 = arith.constant 0 : i32
    return %arg0, %c0_i32, %c0_i32_0 : i32, i32, i32
  }
  func.func @transform_1(%arg0: i32) -> (i32, i32) {
    %c0_i32 = arith.constant 0 : i32
    %c0_i32_0 = arith.constant 0 : i32
    %c0_i32_1 = arith.constant 0 : i32
    return %c0_i32, %c0_i32_0 : i32, i32
  }
  func.func @transform_2(%arg0: i32) -> (i32, i32) {
    %c0_i32 = arith.constant 0 : i32
    %c0_i32_0 = arith.constant 0 : i32
    %c0_i32_1 = arith.constant 0 : i32
    return %c0_i32, %c0_i32_0 : i32, i32
  }
  func.func @transform_3(%arg0: i32) -> (i32, i32) {
    %c0_i32 = arith.constant 0 : i32
    %c0_i32_0 = arith.constant 0 : i32
    %c0_i32_1 = arith.constant 0 : i32
    return %c0_i32, %c0_i32_0 : i32, i32
  }
  func.func @transform_4(%arg0: i32) -> (i32, i32) {
    %c0_i32 = arith.constant 0 : i32
    %c0_i32_0 = arith.constant 0 : i32
    %c0_i32_1 = arith.constant 0 : i32
    return %c0_i32, %c0_i32_0 : i32, i32
  }
  func.func @transform_5(%arg0: i32) -> (i32, i32) {
    %c0_i32 = arith.constant 0 : i32
    %c0_i32_0 = arith.constant 0 : i32
    %c0_i32_1 = arith.constant 0 : i32
    return %c0_i32, %c0_i32_0 : i32, i32
  }
  func.func @transform_6(%arg0: i32) -> (i32, i32, i32) {
    %c0_i32 = arith.constant 0 : i32
    %c0_i32_0 = arith.constant 0 : i32
    %c0_i32_1 = arith.constant 0 : i32
    return %arg0, %c0_i32, %c0_i32_0 : i32, i32, i32
  }
}

</mosaic_0001>

<bundles_post_ra>
// kernel: tpu_custom_call.1
= control target key start
LH: loop header
LB: loop body
LE: loop exit
PB: predicated region body
PF: predicated region fallthrough
CT: control target
= control target key end

     0   :  { %11 = vsyncpa [#allocation3], 0  ;;  %s3768_s0 = inlined_call_operand.vmem [shape: f32[2,4,16], index: 0, kind: input, shape index: {}]   ;;  %s3769_s1 = inlined_call_operand.vmem [shape: f32[96,4], index: 1, kind: input, shape index: {}]   ;;  %s3770_s2 = inlined_call_operand.vmem [shape: f32[420,16], index: 2, kind: input, shape index: {}]   ;;  %s3771_s3 = inlined_call_operand.vmem [shape: f32[132,32], index: 3, kind: input, shape index: {}]   ;;  %s3772_s4 = inlined_call_operand.vmem [shape: f32[176,128], index: 4, kind: input, shape index: {}]   ;;  %s3773_s5 = inlined_call_operand.vmem [shape: f32[112,288], index: 5, kind: input, shape index: {}]   ;;  %s3774_s6 = inlined_call_operand.hbm [shape: f32[2,4,16], index: 6, kind: output, shape index: {}]  }
   0x1   :  { %13 = vsyncpa [#allocation3 + $0x1], 0  ;;  %s2958_s21 = smov 0   ;;  %s2960_s22 = smov 0  }
   0x2   :  { %s2962_s23 = smov 0   ;;  %s2964_s24 = smov 0  }
   0x3 LB: > { %s2979_s25 = sadd.s32 4294967295, %s2918_s24   ;;  %s2192_s26 = sadd.s32 4294967294, %s2918_s24   ;;  %s2918_s24 = sphi %s2964_s24, %s3780_s24   ;;  %s2914_s23 = sphi %s2962_s23, %s3779_s23   ;;  %s2910_s22 = sphi %s2960_s22, %s3778_s22   ;;  %s2906_s21 = sphi %s2958_s21, %s3777_s21  }
   0x4   : > { %s2983_s27 = sadd.s32 1, %s2918_s24   ;;  %s157_s28 = sadd.s32 1, %s2914_s23 }
   0x5   : > { %s154_s29 = ssub.s32 %s2918_s24, %s2983_s27  ;;  %p167_p0 = scmp.ne.s32.totalorder %s2914_s23, %s2910_s22 }
   0x6   : > { %p155_p1 = scmp.eq.s32.totalorder %s154_s29, 0  ;;  %p168_p2 = scmp.eq.s32.totalorder %s2979_s25, 1 }
   0x7   : > { %p173_p3 = scmp.ne.s32.totalorder %s2910_s22, %s2906_s21  ;;  %p174_p4 = scmp.eq.s32.totalorder %s2192_s26, 1 }
   0x8   : > { %s2994_s30 = scalar_select %p155_p1, %s2914_s23, %s157_s28  }
   0x9   : > { %p2996_p5 = por %p168_p2, %p167_p0  ;;  %p3000_p6 = por %p174_p4, %p173_p3 }
   0xa   : > { %p2195_p7 = scmp.ge.s32.totalorder %s2918_s24, 1  ;;  %p214_p8 = scmp.lt.s32.totalorder %s2918_s24, 3 }
   0xc   : > { %p215_p9 = pnand %p2195_p7, %p214_p8 }
   0xd   : > { %p243_p10 = scmp.lt.s32.totalorder (!%p215_p9), %s2979_s25, 1  ;;  %s240_s19 = sand.u32 (!%p215_p9), 1, %s2910_s22  }
   0xe   : > { %218 = sbr.rel (%p215_p9) target bundleno = 1833 (0x729), region = 44  ;;  %s2196_s20 = sshll.u32 (!%p215_p9), %s240_s19, 2 }
   0xf   : > { %s2289_s29 = sshll.u32 (!%p215_p9), %s2979_s25, 6  ;;  %s242_s9 = scalar_lea.vmem (!%p215_p9), [#allocation2], %s2196_s20 }
  0x10   : > { %s2133_s10 = sshll.u32 (!%p215_p9), %s242_s9, 4  ;;  %s3733_s13 = scalar_lea.hbm (!%p215_p9), %s3774_s6, %s2289_s29  ;;  %s2134_s10 = int_to_ptr.vmem [resolvable:$true] %s2133_s10 }
  0x11   : > { %s2120_s14 = scalar_lea.sflag (!%p215_p9), [#allocation3], %s240_s19  ;;  %s2858_s15 = scalar_lea.vmem (!%p215_p9), %s2134_s10, 64 }
  0x12   : > { %p2859_p11 = scmp.ne.s32.totalorder (!%p215_p9), %s2134_s10, %s2858_s15 }
  0x13   : > { %v382_v0 = vld [vmem:[%s3769_s1] sm:$0xff]  ;;  %vm394_vm0 = vcmask 31744   ;;  %s244_s11 = scalar_select %p243_p10, %s2979_s25, 1  ;;  %vm431_vm1 = vcmask 1043456   ;;  %v383_v3 = vld [vmem:[%s3769_s1 + $0x8] sm:$0xff]  ;;  %v384_v4 = vld [vmem:[%s3769_s1 + $0x10] sm:$0xff] }
  0x14   : > { %2508 = vmatprep.mubr.msk.f32.mxu0 %vm394_vm0, %v382_v0  ;;  %v252_v1 = vld [vmem:[%s3773_s5 + $0x20] sm:$0xff]  ;;  %v385_v5 = vld [vmem:[%s3769_s1 + $0x18] sm:$0xff]  ;;  %v387_v7 = vld [vmem:[%s3769_s1 + $0x28] sm:$0xff]  ;;  %v2920_v19 = vmov 0.0   ;;  %vm560_vm2 = vcmask 130048   ;;  %vm895_vm3 = vcmask 261120   ;;  %p2860_p12 = pnand %p2859_p11, %p2996_p5 }
  0x15   : > { %s2197_s12 = sshll.u32 %s244_s11, 2  ;;  %625 = vmatprep.subr.mxu1 %v252_v1  ;;  %v386_v6 = vld [vmem:[%s3769_s1 + $0x20] sm:$0xff]  ;;  %v388_v8 = vld [vmem:[%s3769_s1 + $0x30] sm:$0xff]  ;;  %v389_v9 = vld [vmem:[%s3769_s1 + $0x38] sm:$0xff]  ;;  %661 = vmatprep.mubr.f32.mxu1 %v2920_v19  ;;  %vm2921_vm4 = vmmov 0   ;;  %vm2117_vm5 = vcmask 125952  }
  0x16   : > { %s246_s17 = scalar_lea.vmem %s3768_s0, %s2197_s12  ;;  %v390_v10 = vld [vmem:[%s3769_s1 + $0x40] sm:$0xff]  ;;  %v391_v11 = vld [vmem:[%s3769_s1 + $0x48] sm:$0xff]  ;;  %v392_v12 = vld [vmem:[%s3769_s1 + $0x50] sm:$0xff]  ;;  %p2861_p13 = pneg %p2860_p12 }
  0x17   : > { %v247_v2 = vld [vmem:[%s246_s17] sm:$0xf]  ;;  %v393_v13 = vld [vmem:[%s3769_s1 + $0x58] sm:$0xff]  ;;  %v253_v15 = vld [vmem:[%s3773_s5 + $0x28] sm:$0xff]  ;;  %s2922_s25 = smov [#allocation2]  }
  0x18   : > { %2506 = vmatprep.subr.msk.mxu0 %vm431_vm1, %v247_v2  ;;  %v251_v14 = vld [vmem:[%s3773_s5 + $0x18] sm:$0xff]  ;;  %v249_v16 = vld [vmem:[%s3773_s5 + $0x8] sm:$0xff]  ;;  %v248_v17 = vld [vmem:[%s3773_s5] sm:$0xff]  ;;  %s2862_s16 = sshll.u32 %s2922_s25, 4  ;;  %s2863_s16 = int_to_ptr.vmem [resolvable:$false] %s2862_s16 }
  0x19   : > { %2507 = vmatpush3.msk.msra.mxu0 %vm431_vm1, %v247_v2  ;;  %626 = vmatpush1.msra.mxu1 %v251_v14  ;;  %v250_v18 = vld [vmem:[%s3773_s5 + $0x10] sm:$0xff]  ;;  %v337_v20 = vld [vmem:[%s3770_s2 + $0x178] sm:$0xff]  ;;  %v335_v29 = vld [vmem:[%s3770_s2 + $0x168] sm:$0xff]  ;;  %s2864_s17 = scalar_lea.vmem %s2863_s16, 128  ;;  %p2865_p0 = scmp.lt.s32.totalorder %s2134_s10, %s2863_s16 }
  0x1a   : > { %2509 = vmatmul.mubr.msk.f32.vlgmr.msra.gmra.mxu0 %vm394_vm0, %v383_v3  ;;  %2526 = vmatprep.subr.mxu0 %v253_v15  ;;  %v341_v21 = vld [vmem:[%s3770_s2 + $0x198] sm:$0xff]  ;;  %v336_v25 = vld [vmem:[%s3770_s2 + $0x170] sm:$0xff]  ;;  %v319_v32 = vld [vmem:[%s3770_s2 + $0xe8] sm:$0xff]  ;;  %p2866_p1 = scmp.lt.s32.totalorder %s2864_s17, %s2858_s15 }
  0x1b   : > { %2511 = vmatprep.mubr.msk.f32.mxu0 %vm394_vm0, %v384_v4  ;;  %627 = vmatprep.subr.mxu1 %v249_v16  ;;  %v321_v24 = vld [vmem:[%s3770_s2 + $0xf8] sm:$0xff]  ;;  %v320_v28 = vld [vmem:[%s3770_s2 + $0xf0] sm:$0xff]  ;;  %v334_v33 = vld [vmem:[%s3770_s2 + $0x160] sm:$0xff] }
  0x1c   : > { %2527 = vmatpush3.msra.mxu0 %v253_v15  ;;  %628 = vmatpush1.msra.mxu1 %v248_v17  ;;  %v318_v36 = vld [vmem:[%s3770_s2 + $0xe0] sm:$0xff]  ;;  %v333_v37 = vld [vmem:[%s3770_s2 + $0x158] sm:$0xff]  ;;  %v332_v41 = vld [vmem:[%s3770_s2 + $0x150] sm:$0xff]  ;;  %p2867_p2 = por %p2866_p1, %p2865_p0 }
  0x1d   : > { %2528 = vmatprep.subr.mxu0 %v250_v18  ;;  %2319 = vmatprep.subr.mxu1 %v337_v20  ;;  %v317_v39 = vld [vmem:[%s3770_s2 + $0xd8] sm:$0xff]  ;;  %v316_v42 = vld [vmem:[%s3770_s2 + $0xd0] sm:$0xff]  ;;  %v331_v44 = vld [vmem:[%s3770_s2 + $0x148] sm:$0xff] }
  0x1e   : > { %2512 = vmatmul.mubr.msk.f32.gmra.mxu0 %vm394_vm0, %v385_v5  ;;  %v315_v45 = vld [vmem:[%s3770_s2 + $0xc8] sm:$0xff]  ;;  %v330_v46 = vld [vmem:[%s3770_s2 + $0x140] sm:$0xff]  ;;  %v329_v49 = vld [vmem:[%s3770_s2 + $0x138] sm:$0xff]  ;;  %p2868_p3 = pnand %p2867_p2, %p2861_p13 }
  0x1f   : > { %2514 = vmatprep.mubr.msk.f32.mxu0 %vm394_vm0, %v386_v6  ;;  %2529 = vmatpush3.msra.mxu0 %v250_v18  ;;  %v314_v47 = vld [vmem:[%s3770_s2 + $0xc0] sm:$0xff]  ;;  %v313_v50 = vld [vmem:[%s3770_s2 + $0xb8] sm:$0xff]  ;;  %v328_v51 = vld [vmem:[%s3770_s2 + $0x130] sm:$0xff] }
  0x20   : > { %2548 = vmatprep.subr.mxu0 %v341_v21  ;;  %v312_v52 = vld [vmem:[%s3770_s2 + $0xb0] sm:$0xff]  ;;  %v327_v53 = vld [vmem:[%s3770_s2 + $0x128] sm:$0xff]  ;;  %v326_v55 = vld [vmem:[%s3770_s2 + $0x120] sm:$0xff] }
  0x21   : > { %v311_v54 = vld [vmem:[%s3770_s2 + $0xa8] sm:$0xff]  ;;  %v310_v56 = vld [vmem:[%s3770_s2 + $0xa0] sm:$0xff]  ;;  %v325_v57 = vld [vmem:[%s3770_s2 + $0x118] sm:$0xff] }
  0x22   : > { %2515 = vmatmul.mubr.msk.f32.gmra.mxu0 %vm394_vm0, %v387_v7  ;;  %v309_v58 = vld [vmem:[%s3770_s2 + $0x98] sm:$0xff]  ;;  %v324_v59 = vld [vmem:[%s3770_s2 + $0x110] sm:$0xff]  ;;  %v323_v62 = vld [vmem:[%s3770_s2 + $0x108] sm:$0xff] }
  0x23   : > { %2517 = vmatprep.mubr.msk.f32.mxu0 %vm394_vm0, %v388_v8  ;;  %v308_v60 = vld [vmem:[%s3770_s2 + $0x90] sm:$0xff]  ;;  %v307_v63 = vld [vmem:[%s3770_s2 + $0x88] sm:$0xff]  ;;  %v322_v1 = vld [vmem:[%s3770_s2 + $0x100] sm:$0xff] }
  0x24   : > { %v340_v61 = vld [vmem:[%s3770_s2 + $0x190] sm:$0xff]  ;;  %v339_v0 = vld [vmem:[%s3770_s2 + $0x188] sm:$0xff]  ;;  %v306_v2 = vld [vmem:[%s3770_s2 + $0x80] sm:$0xff] }
  0x25   : > { %v338_v3 = vld [vmem:[%s3770_s2 + $0x180] sm:$0xff]  ;;  %v255_v5 = vld [vmem:[%s3773_s5 + $0x38] sm:$0xff]  ;;  %v254_v6 = vld [vmem:[%s3773_s5 + $0x30] sm:$0xff] }
  0x26   : > { %2518 = vmatmul.mubr.msk.f32.gmra.mxu0 %vm394_vm0, %v389_v9  ;;  %v256_v8 = vld [vmem:[%s3773_s5 + $0x40] sm:$0xff]  ;;  %v259_v9 = vld [vmem:[%s3773_s5 + $0x58] sm:$0xff]  ;;  %v258_v16 = vld [vmem:[%s3773_s5 + $0x50] sm:$0xff] }
  0x27   : > { %2520 = vmatprep.mubr.msk.f32.mxu0 %vm394_vm0, %v390_v10  ;;  %v257_v18 = vld [vmem:[%s3773_s5 + $0x48] sm:$0xff] }
  0x2a   : > { %2521 = vmatmul.mubr.msk.f32.gmra.mxu0 %vm394_vm0, %v391_v11 }
  0x2b   : > { %2523 = vmatprep.mubr.msk.f32.mxu0 %vm394_vm0, %v392_v12 }
  0x2e   : > { %2524 = vmatmul.mubr.msk.f32.gmra.mxu0 %vm394_vm0, %v393_v13 }
  0xda   : > { %v2510_v22 = vpop.f32.mrf.mxu0 }
  0xdc   : > { %v501_v23 = vpop.f32.mrf.mxu0 }
  0xdd   : > { %2211 = vmatmul.mubr.msk.f32.vlgmr.msra.gmra.mxu1 %vm560_vm2, %v501_v23  ;;  %2530 = vmatprep.mubr.msk.f32.mxu0 %vm560_vm2, %v501_v23 }
  0xde   : > { %v2513_v26 = vpop.f32.mrf.mxu0  ;;  %2531 = vmatmul.mubr.msk.f32.vlgmr.msra.gmra.mxu0 %vm560_vm2, %v2510_v22  ;;  %667 = vmatprep.mubr.f32.mxu1 %v2920_v19 }
  0xdf   : > { %2320 = vmatpush3.msra.mxu1 %v321_v24  ;;  %2549 = vmatpush3.msra.mxu0 %v341_v21  ;;  %v262_v21 = vld [vmem:[%s3773_s5 + $0x70] sm:$0xff] }
  0xe0   : > { %v511_v27 = vpop.f32.mrf.mxu0  ;;  %2321 = vmatprep.subr.mxu1 %v336_v25  ;;  %2550 = vmatprep.subr.mxu0 %v340_v61 }
  0xe1   : > { %2212 = vmatmul.mubr.msk.f32.gmra.mxu1 %vm560_vm2, %v2510_v22  ;;  %2533 = vmatprep.mubr.msk.f32.mxu0 %vm560_vm2, %v511_v27  ;;  %v265_v22 = vld [vmem:[%s3773_s5 + $0x88] sm:$0xff] }
  0xe2   : > { %v2516_v30 = vpop.f32.mrf.mxu0  ;;  %2534 = vmatmul.mubr.msk.f32.gmra.mxu0 %vm560_vm2, %v2513_v26  ;;  %673 = vmatprep.mubr.f32.mxu1 %v2920_v19 }
  0xe3   : > { %2322 = vmatpush3.msra.mxu1 %v320_v28  ;;  %2551 = vmatpush3.msra.mxu0 %v340_v61 }
  0xe4   : > { %v521_v31 = vpop.f32.mrf.mxu0  ;;  %2323 = vmatprep.subr.mxu1 %v335_v29  ;;  %2552 = vmatprep.subr.mxu0 %v339_v0  ;;  %v271_v29 = vld [vmem:[%s3773_s5 + $0xb8] sm:$0xff] }
  0xe5   : > { %2213 = vmatmul.mubr.msk.f32.gmra.mxu1 %vm560_vm2, %v511_v27  ;;  %2536 = vmatprep.mubr.msk.f32.mxu0 %vm560_vm2, %v521_v31 }
  0xe6   : > { %2537 = vmatmul.mubr.msk.f32.gmra.mxu0 %vm560_vm2, %v2516_v30  ;;  %679 = vmatprep.mubr.f32.mxu1 %v2920_v19  ;;  %v2519_v34 = vpop.f32.mrf.mxu0 }
  0xe7   : > { %2324 = vmatpush3.msra.mxu1 %v319_v32  ;;  %2553 = vmatpush3.msra.mxu0 %v339_v0  ;;  %v260_v32 = vld [vmem:[%s3773_s5 + $0x60] sm:$0xff] }
  0xe8   : > { %v531_v35 = vpop.f32.mrf.mxu0  ;;  %2325 = vmatprep.subr.mxu1 %v334_v33  ;;  %2554 = vmatprep.subr.mxu0 %v338_v3 }
  0xe9   : > { %2214 = vmatmul.mubr.msk.f32.gmra.mxu1 %vm560_vm2, %v2513_v26  ;;  %2539 = vmatprep.mubr.msk.f32.mxu0 %vm560_vm2, %v531_v35 }
  0xea   : > { %685 = vmatprep.mubr.f32.mxu1 %v2920_v19  ;;  %2540 = vmatmul.mubr.msk.f32.gmra.mxu0 %vm560_vm2, %v2519_v34  ;;  %v2522_v38 = vpop.f32.mrf.mxu0 }
  0xeb   : > { %2326 = vmatpush3.msra.mxu1 %v318_v36  ;;  %2555 = vmatpush3.msra.mxu0 %v338_v3 }
  0xec   : > { %v541_v40 = vpop.f32.mrf.mxu0  ;;  %2327 = vmatprep.subr.mxu1 %v333_v37 }
  0xed   : > { %2215 = vmatmul.mubr.msk.f32.gmra.mxu1 %vm560_vm2, %v521_v31  ;;  %2542 = vmatprep.mubr.msk.f32.mxu0 %vm560_vm2, %v541_v40 }
  0xee   : > { %691 = vmatprep.mubr.f32.mxu1 %v2920_v19  ;;  %2328 = vmatpush3.msra.mxu1 %v317_v39  ;;  %v2525_v43 = vpop.f32.mrf.mxu0 }
  0xef   : > { %2329 = vmatprep.subr.mxu1 %v332_v41  ;;  %2543 = vmatmul.mubr.msk.f32.gmra.mxu0 %vm560_vm2, %v2522_v38 }
  0xf0   : > { %2330 = vmatpush3.msra.mxu1 %v316_v42  ;;  %v551_v48 = vpop.f32.mrf.mxu0  ;;  %v264_v42 = vld [vmem:[%s3773_s5 + $0x80] sm:$0xff] }
  0xf1   : > { %2216 = vmatmul.mubr.msk.f32.gmra.mxu1 %vm560_vm2, %v2516_v30  ;;  %2331 = vmatprep.subr.mxu1 %v331_v44  ;;  %v261_v30 = vld [vmem:[%s3773_s5 + $0x68] sm:$0xff]  ;;  %v263_v44 = vld [vmem:[%s3773_s5 + $0x78] sm:$0xff] }
  0xf2   : > { %697 = vmatprep.mubr.f32.mxu1 %v2920_v19  ;;  %2332 = vmatpush3.msra.mxu1 %v315_v45 }
  0xf3   : > { %2333 = vmatprep.subr.mxu1 %v330_v46  ;;  %2545 = vmatprep.mubr.msk.f32.mxu0 %vm560_vm2, %v551_v48  ;;  %v274_v46 = vld [vmem:[%s3773_s5 + $0xd0] sm:$0xff] }
  0xf4   : > { %2334 = vmatpush3.msra.mxu1 %v314_v47  ;;  %2546 = vmatmul.mubr.msk.f32.gmra.mxu0 %vm560_vm2, %v2525_v43 }
  0xf5   : > { %2217 = vmatmul.mubr.msk.f32.gmra.mxu1 %vm560_vm2, %v531_v35  ;;  %2335 = vmatprep.subr.mxu1 %v329_v49 }
  0xf6   : > { %703 = vmatprep.mubr.f32.mxu1 %v2920_v19  ;;  %2336 = vmatpush3.msra.mxu1 %v313_v50 }
  0xf7   : > { %2337 = vmatprep.subr.mxu1 %v328_v51 }
  0xf8   : > { %2338 = vmatpush3.msra.mxu1 %v312_v52 }
  0xf9   : > { %2218 = vmatmul.mubr.msk.f32.gmra.mxu1 %vm560_vm2, %v2519_v34  ;;  %2339 = vmatprep.subr.mxu1 %v327_v53  ;;  %v268_v34 = vld [vmem:[%s3773_s5 + $0xa0] sm:$0xff]  ;;  %v267_v53 = vld [vmem:[%s3773_s5 + $0x98] sm:$0xff] }
  0xfa   : > { %709 = vmatprep.mubr.f32.mxu1 %v2920_v19  ;;  %2340 = vmatpush3.msra.mxu1 %v311_v54 }
  0xfb   : > { %2341 = vmatprep.subr.mxu1 %v326_v55  ;;  %v266_v55 = vld [vmem:[%s3773_s5 + $0x90] sm:$0xff] }
  0xfc   : > { %2342 = vmatpush3.msra.mxu1 %v310_v56  ;;  %v283_v56 = vld [vmem:[%s3773_s5 + $0x118] sm:$0xff] }
  0xfd   : > { %2219 = vmatmul.mubr.msk.f32.gmra.mxu1 %vm560_vm2, %v541_v40  ;;  %2343 = vmatprep.subr.mxu1 %v325_v57 }
  0xfe   : > { %715 = vmatprep.mubr.f32.mxu1 %v2920_v19  ;;  %2344 = vmatpush3.msra.mxu1 %v309_v58 }
  0xff   : > { %2345 = vmatprep.subr.mxu1 %v324_v59  ;;  %v280_v59 = vld [vmem:[%s3773_s5 + $0x100] sm:$0xff] }
 0x100   : > { %2346 = vmatpush3.msra.mxu1 %v308_v60 }
 0x101   : > { %2220 = vmatmul.mubr.msk.f32.gmra.mxu1 %vm560_vm2, %v2522_v38  ;;  %2347 = vmatprep.subr.mxu1 %v323_v62 }
 0x102   : > { %721 = vmatprep.mubr.f32.mxu1 %v2920_v19  ;;  %2348 = vmatpush3.msra.mxu1 %v307_v63  ;;  %v270_v63 = vld [vmem:[%s3773_s5 + $0xb0] sm:$0xff] }
 0x103   : > { %2349 = vmatprep.subr.mxu1 %v322_v1 }
 0x104   : > { %2350 = vmatpush3.msra.mxu1 %v306_v2  ;;  %v269_v2 = vld [vmem:[%s3773_s5 + $0xa8] sm:$0xff] }
 0x105   : > { %2221 = vmatmul.mubr.msk.f32.gmra.mxu1 %vm560_vm2, %v551_v48 }
 0x106   : > { %727 = vmatprep.mubr.f32.mxu1 %v2920_v19 }
 0x109   : > { %2222 = vmatmul.mubr.msk.f32.gmra.mxu1 %vm560_vm2, %v2525_v43  ;;  %v277_v43 = vld [vmem:[%s3773_s5 + $0xe8] sm:$0xff] }
 0x19d   : > { %v663_v4 = vpop.f32.mrf.mxu1 }
 0x19e   : > { %v2532_v7 = vpop.f32.mrf.mxu0  ;;  %v859_v13 = vmul.f32 %v663_v4, %v254_v6 }
 0x19f   : > { %v665_v10 = vpop.f32.mrf.mxu1  ;;  %v864_v17 = vmul.f32 %v2532_v7, %v259_v9 }
 0x1a0   : > { %v860_v11 = vmul.f32 %v665_v10, %v255_v5  ;;  %v800_v12 = vpop.f32.mrf.mxu0  ;;  %v289_v5 = vld [vmem:[%s3773_s5 + $0x148] sm:$0xff] }
 0x1a1   : > { %v861_v14 = vmul.f32 %v800_v12, %v256_v8  ;;  %v669_v15 = vpop.f32.mrf.mxu1  ;;  %v286_v8 = vld [vmem:[%s3773_s5 + $0x130] sm:$0xff]  ;;  %v272_v12 = vld [vmem:[%s3773_s5 + $0xc0] sm:$0xff] }
 0x1a2   : > { %v2535_v20 = vpop.f32.mrf.mxu0  ;;  %996 = vmatprep.mubr.f32.mxu1 %v860_v11  ;;  %v862_v26 = vmul.f32 %v669_v15, %v257_v18  ;;  %v273_v11 = vld [vmem:[%s3773_s5 + $0xc8] sm:$0xff] }
 0x1a3   : > { %v671_v23 = vpop.f32.mrf.mxu1  ;;  %997 = vmatmul.mubr.f32.vlgmr.msra.gmra.mxu1 %v859_v13  ;;  %2556 = vmatprep.mubr.msk.f32.mxu0 %vm895_vm3, %v861_v14  ;;  %v870_v31 = vmul.f32 %v2535_v20, %v265_v22  ;;  %v275_v22 = vld [vmem:[%s3773_s5 + $0xd8] sm:$0xff] }
 0x1a4   : > { %v863_v24 = vmul.f32 %v671_v23, %v258_v16  ;;  %v810_v25 = vpop.f32.mrf.mxu0  ;;  %2557 = vmatmul.mubr.msk.f32.vlgmr.msra.gmra.mxu0 %vm895_vm3, %v864_v17 }
 0x1a5   : > { %v867_v27 = vmul.f32 %v810_v25, %v262_v21  ;;  %v675_v28 = vpop.f32.mrf.mxu1  ;;  %v276_v21 = vld [vmem:[%s3773_s5 + $0xe0] sm:$0xff]  ;;  %v278_v25 = vld [vmem:[%s3773_s5 + $0xf0] sm:$0xff] }
 0x1a6   : > { %v2538_v33 = vpop.f32.mrf.mxu0  ;;  %1001 = vmatprep.mubr.f32.mxu1 %v863_v24  ;;  %v865_v39 = vmul.f32 %v675_v28, %v260_v32  ;;  %v279_v28 = vld [vmem:[%s3773_s5 + $0xf8] sm:$0xff]  ;;  %v281_v32 = vld [vmem:[%s3773_s5 + $0x108] sm:$0xff] }
 0x1a7   : > { %v677_v35 = vpop.f32.mrf.mxu1  ;;  %1002 = vmatmul.mubr.f32.gmra.mxu1 %v862_v26  ;;  %2559 = vmatprep.mubr.msk.f32.mxu0 %vm895_vm3, %v867_v27  ;;  %v876_v36 = vmul.f32 %v2538_v33, %v271_v29 }
 0x1a8   : > { %v866_v37 = vmul.f32 %v677_v35, %v261_v30  ;;  %v820_v38 = vpop.f32.mrf.mxu0  ;;  %2560 = vmatmul.mubr.msk.f32.gmra.mxu0 %vm895_vm3, %v870_v31 }
 0x1a9   : > { %v873_v40 = vmul.f32 %v820_v38, %v268_v34  ;;  %v681_v41 = vpop.f32.mrf.mxu1  ;;  %v282_v34 = vld [vmem:[%s3773_s5 + $0x110] sm:$0xff]  ;;  %v284_v38 = vld [vmem:[%s3773_s5 + $0x120] sm:$0xff] }
 0x1aa   : > { %1006 = vmatprep.mubr.f32.mxu1 %v866_v37  ;;  %v2541_v45 = vpop.f32.mrf.mxu0  ;;  %v868_v51 = vmul.f32 %v681_v41, %v263_v44  ;;  %v287_v44 = vld [vmem:[%s3773_s5 + $0x138] sm:$0xff] }
 0x1ab   : > { %v683_v47 = vpop.f32.mrf.mxu1  ;;  %1007 = vmatmul.mubr.f32.gmra.mxu1 %v865_v39  ;;  %2562 = vmatprep.mubr.msk.f32.mxu0 %vm895_vm3, %v873_v40  ;;  %v882_v49 = vmul.f32 %v2541_v45, %v277_v43  ;;  %v285_v40 = vld [vmem:[%s3773_s5 + $0x128] sm:$0xff] }
 0x1ac   : > { %v869_v48 = vmul.f32 %v683_v47, %v264_v42  ;;  %2563 = vmatmul.mubr.msk.f32.gmra.mxu0 %vm895_vm3, %v876_v36  ;;  %v830_v50 = vpop.f32.mrf.mxu0 }
 0x1ad   : > { %v687_v52 = vpop.f32.mrf.mxu1  ;;  %v879_v54 = vmul.f32 %v830_v50, %v274_v46  ;;  %v288_v46 = vld [vmem:[%s3773_s5 + $0x140] sm:$0xff] }
 0x1ae   : > { %1011 = vmatprep.mubr.f32.mxu1 %v869_v48  ;;  %v871_v61 = vmul.f32 %v687_v52, %v266_v55  ;;  %v290_v50 = vld [vmem:[%s3770_s2] sm:$0xff] }
 0x1af   : > { %v689_v57 = vpop.f32.mrf.mxu1  ;;  %1012 = vmatmul.mubr.f32.gmra.mxu1 %v868_v51  ;;  %2565 = vmatprep.mubr.msk.f32.mxu0 %vm895_vm3, %v879_v54  ;;  %v2544_v58 = vpop.f32.mrf.mxu0 }
 0x1b0   : > { %v872_v60 = vmul.f32 %v689_v57, %v267_v53  ;;  %2566 = vmatmul.mubr.msk.f32.gmra.mxu0 %vm895_vm3, %v882_v49  ;;  %v888_v0 = vmul.f32 %v2544_v58, %v283_v56 }
 0x1b1   : > { %v693_v62 = vpop.f32.mrf.mxu1  ;;  %v840_v1 = vpop.f32.mrf.mxu0 }
 0x1b2   : > { %1016 = vmatprep.mubr.f32.mxu1 %v872_v60  ;;  %v885_v3 = vmul.f32 %v840_v1, %v280_v59  ;;  %v874_v9 = vmul.f32 %v693_v62, %v269_v2 }
 0x1b3   : > { %v695_v4 = vpop.f32.mrf.mxu1  ;;  %1017 = vmatmul.mubr.f32.gmra.mxu1 %v871_v61 }
 0x1b4   : > { %v875_v6 = vmul.f32 %v695_v4, %v270_v63  ;;  %2568 = vmatprep.mubr.msk.f32.mxu0 %vm895_vm3, %v885_v3  ;;  %v2547_v7 = vpop.f32.mrf.mxu0 }
 0x1b5   : > { %v699_v10 = vpop.f32.mrf.mxu1  ;;  %2569 = vmatmul.mubr.msk.f32.gmra.mxu0 %vm895_vm3, %v888_v0  ;;  %v894_v13 = vmul.f32 %v2547_v7, %v289_v5 }
 0x1b6   : > { %1021 = vmatprep.mubr.f32.mxu1 %v875_v6  ;;  %v850_v14 = vpop.f32.mrf.mxu0  ;;  %v877_v18 = vmul.f32 %v699_v10, %v272_v12 }
 0x1b7   : > { %v701_v15 = vpop.f32.mrf.mxu1  ;;  %1022 = vmatmul.mubr.f32.gmra.mxu1 %v874_v9  ;;  %v891_v16 = vmul.f32 %v850_v14, %v286_v8 }
 0x1b8   : > { %v878_v17 = vmul.f32 %v701_v15, %v273_v11 }
 0x1b9   : > { %v705_v20 = vpop.f32.mrf.mxu1  ;;  %2571 = vmatprep.mubr.msk.f32.mxu0 %vm895_vm3, %v891_v16 }
 0x1ba   : > { %1026 = vmatprep.mubr.f32.mxu1 %v878_v17  ;;  %2572 = vmatmul.mubr.msk.f32.gmra.mxu0 %vm895_vm3, %v894_v13  ;;  %v880_v26 = vmul.f32 %v705_v20, %v275_v22 }
 0x1bb   : > { %v707_v23 = vpop.f32.mrf.mxu1  ;;  %1027 = vmatmul.mubr.f32.gmra.mxu1 %v877_v18  ;;  %2582 = vmatprep.mubr.msk.f32.mxu0 %vm560_vm2, %v290_v50  ;;  %v344_v50 = vld [vmem:[%s3771_s3 + $0x8] sm:$0xff] }
 0x1bc   : > { %v881_v24 = vmul.f32 %v707_v23, %v276_v21 }
 0x1bd   : > { %v711_v27 = vpop.f32.mrf.mxu1 }
 0x1be   : > { %1031 = vmatprep.mubr.f32.mxu1 %v881_v24  ;;  %v883_v29 = vmul.f32 %v711_v27, %v278_v25 }
 0x1bf   : > { %1032 = vmatmul.mubr.f32.gmra.mxu1 %v880_v26  ;;  %v713_v30 = vpop.f32.mrf.mxu1 }
 0x1c0   : > { %v884_v31 = vmul.f32 %v713_v30, %v279_v28  ;;  %v291_v28 = vld [vmem:[%s3770_s2 + $0x8] sm:$0xff]  ;;  %v293_v30 = vld [vmem:[%s3770_s2 + $0x18] sm:$0xff] }
 0x1c1   : > { %v717_v33 = vpop.f32.mrf.mxu1 }
 0x1c2   : > { %1036 = vmatprep.mubr.f32.mxu1 %v884_v31  ;;  %v886_v35 = vmul.f32 %v717_v33, %v281_v32  ;;  %v294_v31 = vld [vmem:[%s3770_s2 + $0x20] sm:$0xff]  ;;  %v295_v32 = vld [vmem:[%s3770_s2 + $0x28] sm:$0xff]  ;;  %v296_v33 = vld [vmem:[%s3770_s2 + $0x30] sm:$0xff] }
 0x1c3   : > { %v719_v36 = vpop.f32.mrf.mxu1  ;;  %1037 = vmatmul.mubr.f32.gmra.mxu1 %v883_v29  ;;  %v292_v29 = vld [vmem:[%s3770_s2 + $0x10] sm:$0xff] }
 0x1c4   : > { %v887_v37 = vmul.f32 %v719_v36, %v282_v34  ;;  %v297_v34 = vld [vmem:[%s3770_s2 + $0x38] sm:$0xff]  ;;  %v299_v36 = vld [vmem:[%s3770_s2 + $0x48] sm:$0xff] }
 0x1c5   : > { %v723_v39 = vpop.f32.mrf.mxu1 }
 0x1c6   : > { %1041 = vmatprep.mubr.f32.mxu1 %v887_v37  ;;  %v889_v41 = vmul.f32 %v723_v39, %v284_v38  ;;  %v300_v37 = vld [vmem:[%s3770_s2 + $0x50] sm:$0xff]  ;;  %v301_v38 = vld [vmem:[%s3770_s2 + $0x58] sm:$0xff]  ;;  %v302_v39 = vld [vmem:[%s3770_s2 + $0x60] sm:$0xff] }
 0x1c7   : > { %v725_v42 = vpop.f32.mrf.mxu1  ;;  %1042 = vmatmul.mubr.f32.gmra.mxu1 %v886_v35  ;;  %v298_v35 = vld [vmem:[%s3770_s2 + $0x40] sm:$0xff] }
 0x1c8   : > { %v890_v43 = vmul.f32 %v725_v42, %v285_v40  ;;  %v303_v40 = vld [vmem:[%s3770_s2 + $0x68] sm:$0xff]  ;;  %v305_v42 = vld [vmem:[%s3770_s2 + $0x78] sm:$0xff] }
 0x1c9   : > { %v729_v45 = vpop.f32.mrf.mxu1 }
 0x1ca   : > { %1046 = vmatprep.mubr.f32.mxu1 %v890_v43  ;;  %v892_v47 = vmul.f32 %v729_v45, %v287_v44  ;;  %v361_v43 = vld [vmem:[%s3772_s4 + $0x8] sm:$0xff] }
 0x1cb   : > { %v731_v48 = vpop.f32.mrf.mxu1  ;;  %1047 = vmatmul.mubr.f32.gmra.mxu1 %v889_v41  ;;  %v304_v41 = vld [vmem:[%s3770_s2 + $0x70] sm:$0xff] }
 0x1cc   : > { %v893_v49 = vmul.f32 %v731_v48, %v288_v46 }
 0x1ce   : > { %1051 = vmatprep.mubr.f32.mxu1 %v893_v49  ;;  %v343_v49 = vld [vmem:[%s3771_s3] sm:$0xff] }
 0x1cf   : > { %1052 = vmatmul.mubr.f32.gmra.mxu1 %v892_v47 }
 0x263   : > { %v2351_v51 = vpop.f32.mrf.mxu1 }
 0x264   : > { %v2558_v54 = vpop.f32.mrf.mxu0 }
 0x265   : > { %v2352_v52 = vpop.f32.mrf.mxu1 }
 0x266   : > { %v1123_v57 = vpop.f32.mrf.mxu0  ;;  %v2353_v5 = vadd.f32 %v2352_v52, %v2351_v51 }
 0x267   : > { %v2354_v53 = vpop.f32.mrf.mxu1 }
 0x268   : > { %v2561_v60 = vpop.f32.mrf.mxu0  ;;  %v1124_v10 = vadd.f32 %v2353_v5, %v1123_v57  ;;  %v346_v57 = vld [vmem:[%s3771_s3 + $0x18] sm:$0xff] }
 0x269   : > { %v2355_v55 = vpop.f32.mrf.mxu1 }
 0x26a   : > { %v2356_v1 = vadd.f32 %v2355_v55, %v2354_v53  ;;  %v1133_v3 = vpop.f32.mrf.mxu0  ;;  %v345_v55 = vld [vmem:[%s3771_s3 + $0x10] sm:$0xff] }
 0x26b   : > { %v2357_v56 = vpop.f32.mrf.mxu1 }
 0x26c   : > { %v1129_v8 = vadd.f32 %v2558_v54, %v2356_v1  ;;  %v2564_v11 = vpop.f32.mrf.mxu0  ;;  %v348_v1 = vld [vmem:[%s3771_s3 + $0x28] sm:$0xff] }
 0x26d   : > { %v2358_v58 = vpop.f32.mrf.mxu1 }
 0x26e   : > { %v2359_v62 = vadd.f32 %v2358_v58, %v2357_v56  ;;  %v1143_v14 = vpop.f32.mrf.mxu0  ;;  %v360_v58 = vld [vmem:[%s3772_s4] sm:$0xff] }
 0x26f   : > { %v2360_v59 = vpop.f32.mrf.mxu1 }
 0x270   : > { %v1134_v6 = vadd.f32 %v2359_v62, %v1133_v3  ;;  %v2567_v16 = vpop.f32.mrf.mxu0 }
 0x271   : > { %v2361_v61 = vpop.f32.mrf.mxu1 }
 0x272   : > { %v2362_v63 = vadd.f32 %v2361_v61, %v2360_v59  ;;  %v1153_v22 = vpop.f32.mrf.mxu0 }
 0x273   : > { %v2363_v0 = vpop.f32.mrf.mxu1 }
 0x274   : > { %v1139_v2 = vadd.f32 %v2561_v60, %v2362_v63  ;;  %v347_v63 = vld [vmem:[%s3771_s3 + $0x20] sm:$0xff] }
 0x275   : > { %v2364_v4 = vpop.f32.mrf.mxu1  ;;  %v3416_v44 = vpop.f32.mrf.mxu0 }
 0x276   : > { %2606 = vmatprep.subr.mxu1 %v1139_v2  ;;  %v2365_v25 = vadd.f32 %v2364_v4, %v2363_v0 }
 0x277   : > { %v2366_v7 = vpop.f32.mrf.mxu1  ;;  %2607 = vmatpush3.msra.mxu1 %v1139_v2  ;;  %v3418_v45 = vpop.f32.mrf.mxu0 }
 0x278   : > { %2608 = vmatprep.subr.mxu1 %v1134_v6  ;;  %v1144_v27 = vadd.f32 %v2365_v25, %v1143_v14 }
 0x279   : > { %v2367_v9 = vpop.f32.mrf.mxu1  ;;  %2609 = vmatpush3.msra.mxu1 %v1134_v6  ;;  %v349_v6 = vld [vmem:[%s3771_s3 + $0x30] sm:$0xff] }
 0x27a   : > { %2610 = vmatprep.subr.mxu1 %v1129_v8  ;;  %v2368_v23 = vadd.f32 %v2367_v9, %v2366_v7  ;;  %v3420_v46 = vpop.f32.mrf.mxu0 }
 0x27b   : > { %v2369_v12 = vpop.f32.mrf.mxu1  ;;  %2611 = vmatpush3.msra.mxu1 %v1129_v8  ;;  %v350_v8 = vld [vmem:[%s3771_s3 + $0x38] sm:$0xff] }
 0x27c   : > { %2612 = vmatprep.subr.mxu1 %v1124_v10  ;;  %v1149_v26 = vadd.f32 %v2564_v11, %v2368_v23  ;;  %v3422_v47 = vpop.f32.mrf.mxu0  ;;  %v354_v23 = vld [vmem:[%s3771_s3 + $0x58] sm:$0xff] }
 0x27d   : > { %v2370_v13 = vpop.f32.mrf.mxu1  ;;  %2613 = vmatpush3.msra.mxu1 %v1124_v10 }
 0x27e   : > { %v2371_v18 = vadd.f32 %v2370_v13, %v2369_v12  ;;  %2694 = vmatprep.subr.mxu1 %v361_v43  ;;  %v351_v13 = vld [vmem:[%s3771_s3 + $0x40] sm:$0xff] }
 0x27f   : > { %v2372_v15 = vpop.f32.mrf.mxu1 }
 0x280   : > { %v1154_v24 = vadd.f32 %v2371_v18, %v1153_v22 }
 0x281   : > { %v2373_v17 = vpop.f32.mrf.mxu1 }
 0x282   : > { %v2374_v20 = vadd.f32 %v2373_v17, %v2372_v15  ;;  %v352_v15 = vld [vmem:[%s3771_s3 + $0x48] sm:$0xff] }
 0x283   : > { %v2375_v56 = vpop.f32.mrf.mxu1 }
 0x284   : > { %v1159_v21 = vadd.f32 %v2567_v16, %v2374_v20 }
 0x285   : > { %v2376_v0 = vpop.f32.mrf.mxu1 }
 0x286   : > { %2574 = vmatprep.subr.msk.mxu0 %vm560_vm2, %v1159_v21 }
 0x287   : > { %2575 = vmatpush3.xpose.msk.msra.mxu0 %vm560_vm2, %v1159_v21  ;;  %v2378_v7 = vpop.f32.mrf.mxu1  ;;  %v353_v21 = vld [vmem:[%s3771_s3 + $0x50] sm:$0xff] }
 0x288   : > { %2576 = vmatprep.subr.msk.mxu0 %vm560_vm2, %v1154_v24 }
 0x289   : > { %v2379_v14 = vpop.f32.mrf.mxu1 }
 0x28b   : > { %2577 = vmatpush3.xpose.msk.msra.mxu0 %vm560_vm2, %v1154_v24  ;;  %v2381_v22 = vpop.f32.mrf.mxu1 }
 0x28c   : > { %2578 = vmatprep.subr.msk.mxu0 %vm560_vm2, %v1149_v26 }
 0x28f   : > { %2579 = vmatpush3.xpose.msk.msra.mxu0 %vm560_vm2, %v1149_v26 }
 0x290   : > { %2580 = vmatprep.subr.msk.mxu0 %vm560_vm2, %v1144_v27 }
 0x293   : > { %2581 = vmatpush3.xpose.msk.msra.mxu0 %vm560_vm2, %v1144_v27 }
 0x296   : > { %2583 = vmatmul.mubr.msk.f32.vlgmr.msra.gmra.mxu0 %vm560_vm2, %v291_v28  ;;  %v355_v28 = vld [vmem:[%s3771_s3 + $0x60] sm:$0xff] }
 0x297   : > { %2585 = vmatprep.mubr.msk.f32.mxu0 %vm560_vm2, %v292_v29  ;;  %v2382_v29 = vpop.f32.mrf.mxu1 }
 0x29a   : > { %2586 = vmatmul.mubr.msk.f32.gmra.mxu0 %vm560_vm2, %v293_v30  ;;  %v356_v30 = vld [vmem:[%s3771_s3 + $0x68] sm:$0xff] }
 0x29b   : > { %2588 = vmatprep.mubr.msk.f32.mxu0 %vm560_vm2, %v294_v31 }
 0x29e   : > { %2589 = vmatmul.mubr.msk.f32.gmra.mxu0 %vm560_vm2, %v295_v32 }
 0x29f   : > { %2591 = vmatprep.mubr.msk.f32.mxu0 %vm560_vm2, %v296_v33 }
 0x2a2   : > { %2592 = vmatmul.mubr.msk.f32.gmra.mxu0 %vm560_vm2, %v297_v34 }
 0x2a3   : > { %2594 = vmatprep.mubr.msk.f32.mxu0 %vm560_vm2, %v298_v35  ;;  %v357_v35 = vld [vmem:[%s3771_s3 + $0x70] sm:$0xff] }
 0x2a6   : > { %2595 = vmatmul.mubr.msk.f32.gmra.mxu0 %vm560_vm2, %v299_v36  ;;  %v2377_v36 = vadd.f32 %v2376_v0, %v2375_v56 }
 0x2a7   : > { %2597 = vmatprep.mubr.msk.f32.mxu0 %vm560_vm2, %v300_v37  ;;  %v2384_v37 = vpop.f32.mrf.mxu1 }
 0x2aa   : > { %2598 = vmatmul.mubr.msk.f32.gmra.mxu0 %vm560_vm2, %v301_v38  ;;  %v358_v38 = vld [vmem:[%s3771_s3 + $0x78] sm:$0xff] }
 0x2ab   : > { %2600 = vmatprep.mubr.msk.f32.mxu0 %vm560_vm2, %v302_v39 }
 0x2ae   : > { %2601 = vmatmul.mubr.msk.f32.gmra.mxu0 %vm560_vm2, %v303_v40 }
 0x2af   : > { %2603 = vmatprep.mubr.msk.f32.mxu0 %vm560_vm2, %v304_v41  ;;  %v2380_v41 = vadd.f32 %v2379_v14, %v2378_v7 }
 0x2b2   : > { %2604 = vmatmul.mubr.msk.f32.gmra.mxu0 %vm560_vm2, %v305_v42 }
 0x356   : > { %v2584_v48 = vpop.f32.mrf.mxu0 }
 0x357   : > { %v1388_v53 = vmul.f32 %v2584_v48, %v344_v50  ;;  %v2383_v48 = vadd.f32 %v2382_v29, %v2381_v22  ;;  %v1169_v50 = vadd.f32 %v3416_v44, %v2380_v41 }
 0x358   : > { %v1308_v51 = vpop.f32.mrf.mxu0 }
 0x359   : > { %v1387_v52 = vmul.f32 %v1308_v51, %v343_v49  ;;  %v2385_v49 = vpop.f32.mrf.mxu1 }
 0x35a   : > { %v2587_v54 = vpop.f32.mrf.mxu0  ;;  %v2386_v51 = vadd.f32 %v2385_v49, %v2384_v37 }
 0x35b   : > { %2614 = vmatprep.mubr.msk.f32.mxu1 %vm895_vm3, %v1387_v52  ;;  %v1390_v61 = vmul.f32 %v2587_v54, %v346_v57  ;;  %v1174_v52 = vadd.f32 %v2383_v48, %v3422_v47 }
 0x35c   : > { %v1318_v59 = vpop.f32.mrf.mxu0  ;;  %2615 = vmatmul.mubr.msk.f32.vlgmr.msra.gmra.mxu1 %vm895_vm3, %v1388_v53  ;;  %v1179_v53 = vadd.f32 %v3420_v46, %v2386_v51 }
 0x35d   : > { %v1389_v60 = vmul.f32 %v1318_v59, %v345_v55  ;;  %2695 = vmatpush3.msra.mxu1 %v361_v43  ;;  %v1164_v43 = vadd.f32 %v2377_v36, %v3418_v45  ;;  %v366_v45 = vld [vmem:[%s3772_s4 + $0x30] sm:$0xff] }
 0x35e   : > { %v2590_v62 = vpop.f32.mrf.mxu0  ;;  %2696 = vmatprep.subr.mxu1 %v360_v58  ;;  %2670 = vmatprep.mubr.f32.mxu0 %v366_v45 }
 0x35f   : > { %2617 = vmatprep.mubr.msk.f32.mxu1 %vm895_vm3, %v1389_v60  ;;  %2697 = vmatpush3.msra.mxu1 %v360_v58  ;;  %v1392_v4 = vmul.f32 %v2590_v62, %v348_v1 }
 0x360   : > { %v1328_v2 = vpop.f32.mrf.mxu0  ;;  %2618 = vmatmul.mubr.msk.f32.gmra.mxu1 %vm895_vm3, %v1390_v61  ;;  %2742 = vmatprep.subr.mxu1 %v2920_v19 }
 0x361   : > { %v1391_v3 = vmul.f32 %v1328_v2, %v347_v63 }
 0x362   : > { %v2593_v5 = vpop.f32.mrf.mxu0 }
 0x363   : > { %2620 = vmatprep.mubr.msk.f32.mxu1 %vm895_vm3, %v1391_v3  ;;  %v1394_v11 = vmul.f32 %v2593_v5, %v350_v8 }
 0x364   : > { %v1338_v9 = vpop.f32.mrf.mxu0  ;;  %2621 = vmatmul.mubr.msk.f32.gmra.mxu1 %vm895_vm3, %v1392_v4 }
 0x365   : > { %v1393_v10 = vmul.f32 %v1338_v9, %v349_v6 }
 0x366   : > { %v2596_v12 = vpop.f32.mrf.mxu0 }
 0x367   : > { %2623 = vmatprep.mubr.msk.f32.mxu1 %vm895_vm3, %v1393_v10  ;;  %v1396_v18 = vmul.f32 %v2596_v12, %v352_v15 }
 0x368   : > { %v1348_v16 = vpop.f32.mrf.mxu0  ;;  %2624 = vmatmul.mubr.msk.f32.gmra.mxu1 %vm895_vm3, %v1394_v11 }
 0x369   : > { %v1395_v17 = vmul.f32 %v1348_v16, %v351_v13 }
 0x36a   : > { %v2599_v20 = vpop.f32.mrf.mxu0 }
 0x36b   : > { %2626 = vmatprep.mubr.msk.f32.mxu1 %vm895_vm3, %v1395_v17  ;;  %v1398_v26 = vmul.f32 %v2599_v20, %v354_v23 }
 0x36c   : > { %v1358_v24 = vpop.f32.mrf.mxu0  ;;  %2627 = vmatmul.mubr.msk.f32.gmra.mxu1 %vm895_vm3, %v1396_v18 }
 0x36d   : > { %v1397_v25 = vmul.f32 %v1358_v24, %v353_v21 }
 0x36e   : > { %v2602_v27 = vpop.f32.mrf.mxu0 }
 0x36f   : > { %2629 = vmatprep.mubr.msk.f32.mxu1 %vm895_vm3, %v1397_v25  ;;  %v1400_v33 = vmul.f32 %v2602_v27, %v356_v30 }
 0x370   : > { %v1368_v31 = vpop.f32.mrf.mxu0  ;;  %2630 = vmatmul.mubr.msk.f32.gmra.mxu1 %vm895_vm3, %v1398_v26 }
 0x371   : > { %v1399_v32 = vmul.f32 %v1368_v31, %v355_v28 }
 0x372   : > { %v2605_v34 = vpop.f32.mrf.mxu0 }
 0x373   : > { %2632 = vmatprep.mubr.msk.f32.mxu1 %vm895_vm3, %v1399_v32  ;;  %v1402_v42 = vmul.f32 %v2605_v34, %v358_v38 }
 0x374   : > { %v1378_v39 = vpop.f32.mrf.mxu0  ;;  %2633 = vmatmul.mubr.msk.f32.gmra.mxu1 %vm895_vm3, %v1400_v33 }
 0x375   : > { %v1401_v40 = vmul.f32 %v1378_v39, %v357_v35 }
 0x377   : > { %2635 = vmatprep.mubr.msk.f32.mxu1 %vm895_vm3, %v1401_v40 }
 0x378   : > { %2636 = vmatmul.mubr.msk.f32.gmra.mxu1 %vm895_vm3, %v1402_v42 }
 0x379   : > { %2698 = vmatprep.mubr.msk.f32.mxu1 %vm560_vm2, %v1164_v43 }
 0x37c   : > { %2699 = vmatmul.mubr.msk.f32.vlgmr.msra.gmra.mxu1 %vm560_vm2, %v1169_v50 }
 0x37d   : > { %2701 = vmatprep.mubr.msk.f32.mxu1 %vm560_vm2, %v1174_v52 }
 0x380   : > { %2702 = vmatmul.mubr.msk.f32.gmra.mxu1 %vm560_vm2, %v1179_v53 }
 0x381   : > { %2750 = vmatprep.mubr.msk.f32.mxu1 %vm2921_vm4, %v2920_v19 }
 0x41c   : > { %v3503_v54 = vpop.f32.mrf.mxu1 }
 0x41d   : > { %v1597_v6 = vsel %vm560_vm2, %v3503_v54, -inf }
 0x41e   : > { %v3505_v55 = vpop.f32.mrf.mxu1 }
 0x41f   : > { %v1596_v0 = vsel %vm560_vm2, %v3505_v55, -inf }
 0x420   : > { %v3507_v44 = vpop.f32.mrf.mxu1 }
 0x421   : > { %v1599_v7 = vsel %vm560_vm2, %v3507_v44, -inf }
 0x422   : > { %v3509_v47 = vpop.f32.mrf.mxu1 }
 0x423   : > { %v1598_v8 = vsel %vm560_vm2, %v3509_v47, -inf }
 0x424   : > { %v3511_v56 = vpop.f32.mrf.mxu1 }
 0x425   : > { %v1602_v2 = vsel %vm560_vm2, %v3511_v56, -inf }
 0x426   : > { %v3513_v57 = vpop.f32.mrf.mxu1  ;;  %v1603_v15 = vmax.f32 %v1597_v6, %v1602_v2 }
 0x427   : > { %v1600_v63 = vsel %vm560_vm2, %v3513_v57, -inf }
 0x428   : > { %v3515_v46 = vpop.f32.mrf.mxu1  ;;  %v1601_v9 = vmax.f32 %v1596_v0, %v1600_v63 }
 0x429   : > { %v1606_v3 = vsel %vm560_vm2, %v3515_v46, -inf }
 0x42a   : > { %v3517_v58 = vpop.f32.mrf.mxu1  ;;  %v1607_v16 = vmax.f32 %v1599_v7, %v1606_v3 }
 0x42b   : > { %v1604_v4 = vsel %vm560_vm2, %v3517_v58, -inf }
 0x42c   : > { %v3519_v59 = vpop.f32.mrf.mxu1  ;;  %v1605_v17 = vmax.f32 %v1598_v8, %v1604_v4 }
 0x42d   : > { %v1610_v11 = vsel %vm560_vm2, %v3519_v59, -inf }
 0x42e   : > { %v3521_v60 = vpop.f32.mrf.mxu1  ;;  %v1611_v23 = vmax.f32 %v1603_v15, %v1610_v11 }
 0x42f   : > { %v1608_v5 = vsel %vm560_vm2, %v3521_v60, -inf }
 0x430   : > { %v2631_v61 = vpop.f32.mrf.mxu1  ;;  %v1609_v18 = vmax.f32 %v1601_v9, %v1608_v5 }
 0x431   : > { %v1614_v12 = vsel %vm560_vm2, %v2631_v61, -inf }
 0x432   : > { %v1567_v62 = vpop.f32.mrf.mxu1  ;;  %v1615_v24 = vmax.f32 %v1607_v16, %v1614_v12 }
 0x433   : > { %v1612_v13 = vsel %vm560_vm2, %v1567_v62, -inf }
 0x434   : > { %v2634_v1 = vpop.f32.mrf.mxu1  ;;  %v1613_v25 = vmax.f32 %v1605_v17, %v1612_v13 }
 0x435   : > { %v1618_v21 = vsel %vm560_vm2, %v2634_v1, -inf }
 0x436   : > { %v1577_v10 = vpop.f32.mrf.mxu1  ;;  %v1619_v29 = vmax.f32 %v1611_v23, %v1618_v21 }
 0x437   : > { %v1616_v14 = vsel %vm560_vm2, %v1577_v10, -inf }
 0x438   : > { %v2637_v20 = vpop.f32.mrf.mxu1  ;;  %v1617_v26 = vmax.f32 %v1609_v18, %v1616_v14 }
 0x439   : > { %v1622_v22 = vsel %vm560_vm2, %v2637_v20, -inf }
 0x43a   : > { %v1587_v27 = vpop.f32.mrf.mxu1  ;;  %v1623_v30 = vmax.f32 %v1615_v24, %v1622_v22  ;;  %v1624_v32 = vmax.f32 %v1617_v26, %v1619_v29  ;;  %v367_v26 = vld [vmem:[%s3772_s4 + $0x38] sm:$0xff]  ;;  %v370_v29 = vld [vmem:[%s3772_s4 + $0x50] sm:$0xff] }
 0x43b   : > { %v1620_v28 = vsel %vm560_vm2, %v1587_v27, -inf }
 0x43c   : > { %v1621_v31 = vmax.f32 %v1613_v25, %v1620_v28  ;;  %v369_v28 = vld [vmem:[%s3772_s4 + $0x48] sm:$0xff] }
 0x43e   : > { %v1625_v33 = vmax.f32 %v1621_v31, %v1623_v30  ;;  %v371_v30 = vld [vmem:[%s3772_s4 + $0x58] sm:$0xff]  ;;  %v372_v31 = vld [vmem:[%s3772_s4 + $0x60] sm:$0xff] }
 0x440   : > { %v1626_v34 = vmax.f32 %v1624_v32, %v1625_v33  ;;  %v373_v32 = vld [vmem:[%s3772_s4 + $0x68] sm:$0xff]  ;;  %v374_v33 = vld [vmem:[%s3772_s4 + $0x70] sm:$0xff] }
 0x442   : > { %v1627_v35 = vrot.slane %v1626_v34, 4 }
 0x444   : > { %v1628_v36 = vmax.f32 %v1626_v34, %v1627_v35  ;;  %v375_v34 = vld [vmem:[%s3772_s4 + $0x78] sm:$0xff]  ;;  %v376_v35 = vld [vmem:[%s3772_s4 + $0x80] sm:$0xff] }
 0x446   : > { %v1629_v37 = vrot.slane %v1628_v36, 2 }
 0x448   : > { %v1630_v38 = vmax.f32 %v1628_v36, %v1629_v37  ;;  %v377_v36 = vld [vmem:[%s3772_s4 + $0x88] sm:$0xff]  ;;  %v378_v37 = vld [vmem:[%s3772_s4 + $0x90] sm:$0xff] }
 0x44a   : > { %v1631_v39 = vrot.slane %v1630_v38, 1 }
 0x44c   : > { %v3549_v40 = vmax.f32 %v1630_v38, %v1631_v39  ;;  %v3677_v38 = vpop.f32.mrf.mxu1  ;;  %v379_v39 = vld [vmem:[%s3772_s4 + $0x98] sm:$0xff] }
 0x44e   : > { %v1647_v41 = vsub.f32 %v1587_v27, %v3549_v40  ;;  %v1648_v42 = vsub.f32 %v2637_v20, %v3549_v40  ;;  %v1646_v43 = vsub.f32 %v2634_v1, %v3549_v40  ;;  %v1645_v50 = vsub.f32 %v1577_v10, %v3549_v40  ;;  %v368_v27 = vld [vmem:[%s3772_s4 + $0x40] sm:$0xff] }
 0x44f   : > { %v1644_v52 = vsub.f32 %v2631_v61, %v3549_v40  ;;  %v1643_v45 = vsub.f32 %v1567_v62, %v3549_v40  ;;  %v1642_v0 = vsub.f32 %v3519_v59, %v3549_v40  ;;  %v1641_v1 = vsub.f32 %v3521_v60, %v3549_v40 }
 0x450   : > { %v1679_v48 = vmul.f32 1.442695, %v1648_v42  ;;  %v1677_v49 = vmul.f32 1.442695, %v1647_v41  ;;  %v1675_v51 = vmul.f32 1.442695, %v1646_v43  ;;  %v1640_v4 = vsub.f32 %v3515_v46, %v3549_v40  ;;  %v1936_v42 = vpop.f32.mrf.mxu1 }
 0x451   : > { %v1673_v53 = vmul.f32 1.442695, %v1645_v50  ;;  %v1671_v63 = vmul.f32 1.442695, %v1644_v52  ;;  %v1669_v2 = vmul.f32 1.442695, %v1643_v45  ;;  %v1639_v62 = vsub.f32 %v3517_v58, %v3549_v40 }
 0x452   : > { %2794 = vpow2.f32 %v1679_v48  ;;  %v1667_v3 = vmul.f32 1.442695, %v1642_v0  ;;  %v1665_v61 = vmul.f32 1.442695, %v1641_v1  ;;  %v1663_v5 = vmul.f32 1.442695, %v1640_v4 }
 0x453   : > { %2796 = vpow2.f32 %v1677_v49  ;;  %v1638_v59 = vsub.f32 %v3511_v56, %v3549_v40  ;;  %v1661_v60 = vmul.f32 1.442695, %v1639_v62  ;;  %v1637_v7 = vsub.f32 %v3513_v57, %v3549_v40  ;;  %v362_v41 = vld [vmem:[%s3772_s4 + $0x10] sm:$0xff]  ;;  %v381_v43 = vld [vmem:[%s3772_s4 + $0xa8] sm:$0xff] }
 0x454   : > { %2798 = vpow2.f32 %v1675_v51  ;;  %v1636_v56 = vsub.f32 %v3507_v44, %v3549_v40  ;;  %v1635_v57 = vsub.f32 %v3509_v47, %v3549_v40  ;;  %v1634_v44 = vsub.f32 %v3503_v54, %v3549_v40 }
 0x455   : > { %2800 = vpow2.f32 %v1673_v53  ;;  %v1659_v58 = vmul.f32 1.442695, %v1638_v59  ;;  %v1657_v9 = vmul.f32 1.442695, %v1637_v7  ;;  %v1633_v47 = vsub.f32 %v3505_v55, %v3549_v40  ;;  %v380_v40 = vld [vmem:[%s3772_s4 + $0xa0] sm:$0xff] }
 0x456   : > { %2802 = vpow2.f32 %v1671_v63  ;;  %v1655_v11 = vmul.f32 1.442695, %v1636_v56  ;;  %v1653_v13 = vmul.f32 1.442695, %v1635_v57  ;;  %v1651_v15 = vmul.f32 1.442695, %v1634_v44 }
 0x457   : > { %2804 = vpow2.f32 %v1669_v2  ;;  %v1649_v16 = vmul.f32 1.442695, %v1633_v47  ;;  %v1955_v48 = vmul.f32 %v1936_v42, %v362_v41  ;;  %v359_v42 = vld [vmem:[%s3771_s3 + $0x80] sm:$0xf] }
 0x458   : > { %2806 = vpow2.f32 %v1667_v3 }
 0x459   : > { %2808 = vpow2.f32 %v1665_v61 }
 0x45a   : > { %2810 = vpow2.f32 %v1663_v5 }
 0x45b   : > { %2812 = vpow2.f32 %v1661_v60 }
 0x45c   : > { %2814 = vpow2.f32 %v1659_v58 }
 0x45d   : > { %2816 = vpow2.f32 %v1657_v9 }
 0x45e   : > { %2818 = vpow2.f32 %v1655_v11 }
 0x45f   : > { %v3567_v6 = vpop.eup %2794  ;;  %2820 = vpow2.f32 %v1653_v13 }
 0x460   : > { %2638 = vmatprep.subr.mxu0 %v3567_v6  ;;  %v3572_v46 = vpop.eup %2796  ;;  %2822 = vpow2.f32 %v1651_v15 }
 0x461   : > { %2639 = vmatpush3.msra.mxu0 %v3567_v6  ;;  %v3578_v8 = vpop.eup %2798  ;;  %2824 = vpow2.f32 %v1649_v16 }
 0x462   : > { %2640 = vmatprep.subr.mxu0 %v3572_v46  ;;  %v3584_v10 = vpop.eup %2800 }
 0x463   : > { %2641 = vmatpush3.msra.mxu0 %v3572_v46  ;;  %v3590_v12 = vpop.eup %2802 }
 0x464   : > { %2642 = vmatprep.subr.mxu0 %v3578_v8  ;;  %v3596_v14 = vpop.eup %2804 }
 0x465   : > { %2643 = vmatpush3.msra.mxu0 %v3578_v8  ;;  %v3600_v54 = vpop.eup %2806 }
 0x466   : > { %2644 = vmatprep.subr.mxu0 %v3584_v10  ;;  %v3604_v17 = vpop.eup %2808 }
 0x467   : > { %2645 = vmatpush3.msra.mxu0 %v3584_v10  ;;  %v3608_v55 = vpop.eup %2810 }
 0x468   : > { %2646 = vmatprep.subr.mxu0 %v3590_v12  ;;  %v3612_v18 = vpop.eup %2812 }
 0x469   : > { %2647 = vmatpush3.msra.mxu0 %v3590_v12  ;;  %v3616_v20 = vpop.eup %2814 }
 0x46a   : > { %2648 = vmatprep.subr.mxu0 %v3596_v14  ;;  %v3620_v21 = vpop.eup %2816 }
 0x46b   : > { %2649 = vmatpush3.msra.mxu0 %v3596_v14  ;;  %v3624_v22 = vpop.eup %2818 }
 0x46c   : > { %2650 = vmatprep.subr.mxu0 %v3600_v54  ;;  %v3628_v23 = vpop.eup %2820 }
 0x46d   : > { %2651 = vmatpush3.msra.mxu0 %v3600_v54  ;;  %v3632_v24 = vpop.eup %2822 }
 0x46e   : > { %2652 = vmatprep.subr.mxu0 %v3604_v17  ;;  %v3636_v25 = vpop.eup %2824 }
 0x46f   : > { %2653 = vmatpush3.msra.mxu0 %v3604_v17 }
 0x470   : > { %2654 = vmatprep.subr.mxu0 %v3608_v55 }
 0x471   : > { %2655 = vmatpush3.msra.mxu0 %v3608_v55 }
 0x472   : > { %2656 = vmatprep.subr.mxu0 %v3612_v18 }
 0x473   : > { %2657 = vmatpush3.msra.mxu0 %v3612_v18 }
 0x474   : > { %2658 = vmatprep.subr.mxu0 %v3616_v20 }
 0x475   : > { %2659 = vmatpush3.msra.mxu0 %v3616_v20 }
 0x476   : > { %2660 = vmatprep.subr.mxu0 %v3620_v21 }
 0x477   : > { %2661 = vmatpush3.msra.mxu0 %v3620_v21 }
 0x478   : > { %2662 = vmatprep.subr.mxu0 %v3624_v22 }
 0x479   : > { %2663 = vmatpush3.msra.mxu0 %v3624_v22 }
 0x47a   : > { %2664 = vmatprep.subr.mxu0 %v3628_v23 }
 0x47b   : > { %2665 = vmatpush3.msra.mxu0 %v3628_v23 }
 0x47c   : > { %2666 = vmatprep.subr.mxu0 %v3632_v24 }
 0x47d   : > { %2667 = vmatpush3.msra.mxu0 %v3632_v24 }
 0x47e   : > { %2668 = vmatprep.subr.mxu0 %v3636_v25 }
 0x47f   : > { %2669 = vmatpush3.msra.mxu0 %v3636_v25 }
 0x480   : > { %2671 = vmatmul.mubr.f32.vlgmr.msra.gmra.mxu0 %v367_v26 }
 0x481   : > { %2673 = vmatprep.mubr.f32.mxu0 %v368_v27 }
 0x484   : > { %2674 = vmatmul.mubr.f32.gmra.mxu0 %v369_v28 }
 0x485   : > { %2676 = vmatprep.mubr.f32.mxu0 %v370_v29 }
 0x488   : > { %2677 = vmatmul.mubr.f32.gmra.mxu0 %v371_v30 }
 0x489   : > { %2679 = vmatprep.mubr.f32.mxu0 %v372_v31 }
 0x48c   : > { %2680 = vmatmul.mubr.f32.gmra.mxu0 %v373_v32 }
 0x48d   : > { %2682 = vmatprep.mubr.f32.mxu0 %v374_v33  ;;  %v2703_v33 = vpop.f32.mrf.mxu1 }
 0x490   : > { %2683 = vmatmul.mubr.f32.gmra.mxu0 %v375_v34 }
 0x491   : > { %2685 = vmatprep.mubr.f32.mxu0 %v376_v35  ;;  %v1946_v35 = vpop.f32.mrf.mxu1 }
 0x494   : > { %2686 = vmatmul.mubr.f32.gmra.mxu0 %v377_v36 }
 0x495   : > { %2688 = vmatprep.mubr.f32.mxu0 %v378_v37 }
 0x498   : > { %2689 = vmatmul.mubr.f32.gmra.mxu0 %v379_v39 }
 0x499   : > { %2691 = vmatprep.mubr.f32.mxu0 %v380_v40 }
 0x49c   : > { %2692 = vmatmul.mubr.f32.gmra.mxu0 %v381_v43  ;;  %v342_v43 = vld [vmem:[%s3770_s2 + $0x1a0] sm:$0xf] }
 0x49d   : > { %2736 = vmatprep.mubr.f32.mxu0 %v1955_v48 }
 0x540   : > { %v2672_v49 = vpop.f32.mrf.mxu0 }
 0x542   : > { %v1747_v50 = vpop.f32.mrf.mxu0 }
 0x544   : > { %v2675_v51 = vpop.f32.mrf.mxu0 }
 0x546   : > { %v1757_v52 = vpop.f32.mrf.mxu0 }
 0x548   : > { %v2678_v53 = vpop.f32.mrf.mxu0 }
 0x54a   : > { %v1767_v45 = vpop.f32.mrf.mxu0 }
 0x54c   : > { %v2681_v63 = vpop.f32.mrf.mxu0 }
 0x54e   : > { %v1777_v0 = vpop.f32.mrf.mxu0 }
 0x550   : > { %v2684_v2 = vpop.f32.mrf.mxu0 }
 0x552   : > { %v1787_v1 = vpop.f32.mrf.mxu0 }
 0x554   : > { %v2687_v3 = vpop.f32.mrf.mxu0 }
 0x556   : > { %v1797_v4 = vpop.f32.mrf.mxu0 }
 0x558   : > { %v2690_v61 = vpop.f32.mrf.mxu0 }
 0x55a   : > { %v1807_v62 = vpop.f32.mrf.mxu0 }
 0x55c   : > { %v2693_v5 = vpop.f32.mrf.mxu0 }
 0x55d   : > { %2826 = vrcp.f32 %v2693_v5 }
 0x55e   : > { %2828 = vrcp.f32 %v2690_v61  ;;  %v1817_v59 = vpop.f32.mrf.mxu0 }
 0x55f   : > { %2830 = vrcp.f32 %v1817_v59 }
 0x560   : > { %2832 = vrcp.f32 %v1807_v62 }
 0x561   : > { %2834 = vrcp.f32 %v2687_v3 }
 0x562   : > { %2836 = vrcp.f32 %v1797_v4 }
 0x563   : > { %2838 = vrcp.f32 %v2684_v2 }
 0x564   : > { %2840 = vrcp.f32 %v1787_v1 }
 0x565   : > { %2842 = vrcp.f32 %v2681_v63 }
 0x566   : > { %2844 = vrcp.f32 %v1777_v0 }
 0x567   : > { %2846 = vrcp.f32 %v2678_v53 }
 0x568   : > { %2848 = vrcp.f32 %v1767_v45 }
 0x569   : > { %2850 = vrcp.f32 %v2675_v51 }
 0x56a   : > { %v2827_v60 = vpop.eup %2826  ;;  %2852 = vrcp.f32 %v1757_v52 }
 0x56b   : > { %v2829_v7 = vpop.eup %2828  ;;  %v1857_v58 = vmul.f32 %v2827_v60, %v3567_v6  ;;  %2854 = vrcp.f32 %v2672_v49 }
 0x56c   : > { %v2831_v56 = vpop.eup %2830  ;;  %v1855_v11 = vmul.f32 %v2829_v7, %v3578_v8  ;;  %2856 = vrcp.f32 %v1747_v50 }
 0x56d   : > { %2704 = vmatprep.subr.mxu0 %v1857_v58  ;;  %v1856_v9 = vmul.f32 %v2831_v56, %v3572_v46  ;;  %v2833_v57 = vpop.eup %2832 }
 0x56e   : > { %2705 = vmatpush3.msra.mxu0 %v1857_v58  ;;  %v2835_v44 = vpop.eup %2834  ;;  %v1854_v13 = vmul.f32 %v2833_v57, %v3584_v10 }
 0x56f   : > { %2706 = vmatprep.subr.mxu0 %v1856_v9  ;;  %v2837_v47 = vpop.eup %2836  ;;  %v1853_v6 = vmul.f32 %v2835_v44, %v3590_v12 }
 0x570   : > { %2707 = vmatpush3.msra.mxu0 %v1856_v9  ;;  %v2839_v15 = vpop.eup %2838  ;;  %v1852_v46 = vmul.f32 %v2837_v47, %v3596_v14 }
 0x571   : > { %2708 = vmatprep.subr.mxu0 %v1855_v11  ;;  %v2841_v16 = vpop.eup %2840  ;;  %v1851_v8 = vmul.f32 %v2839_v15, %v3600_v54 }
 0x572   : > { %2709 = vmatpush3.msra.mxu0 %v1855_v11  ;;  %v2843_v26 = vpop.eup %2842  ;;  %v1850_v10 = vmul.f32 %v2841_v16, %v3604_v17 }
 0x573   : > { %2710 = vmatprep.subr.mxu0 %v1854_v13  ;;  %v2845_v27 = vpop.eup %2844  ;;  %v1849_v12 = vmul.f32 %v2843_v26, %v3608_v55 }
 0x574   : > { %2711 = vmatpush3.msra.mxu0 %v1854_v13  ;;  %v2847_v28 = vpop.eup %2846  ;;  %v1848_v14 = vmul.f32 %v2845_v27, %v3612_v18 }
 0x575   : > { %2712 = vmatprep.subr.mxu0 %v1853_v6  ;;  %v2849_v29 = vpop.eup %2848  ;;  %v1847_v54 = vmul.f32 %v2847_v28, %v3616_v20 }
 0x576   : > { %2713 = vmatpush3.msra.mxu0 %v1853_v6  ;;  %v2851_v30 = vpop.eup %2850  ;;  %v1846_v17 = vmul.f32 %v2849_v29, %v3620_v21  ;;  %v363_v21 = vld [vmem:[%s3772_s4 + $0x18] sm:$0xff] }
 0x577   : > { %2714 = vmatprep.subr.mxu0 %v1852_v46  ;;  %v2853_v31 = vpop.eup %2852  ;;  %v1845_v55 = vmul.f32 %v2851_v30, %v3624_v22  ;;  %v364_v22 = vld [vmem:[%s3772_s4 + $0x20] sm:$0xff] }
 0x578   : > { %2715 = vmatpush3.msra.mxu0 %v1852_v46  ;;  %v2855_v32 = vpop.eup %2854  ;;  %v1844_v18 = vmul.f32 %v2853_v31, %v3628_v23  ;;  %v1956_v23 = vmul.f32 %v3677_v38, %v363_v21  ;;  %v1957_v37 = vmul.f32 %v1946_v35, %v364_v22 }
 0x579   : > { %2716 = vmatprep.subr.mxu0 %v1851_v8  ;;  %v2857_v34 = vpop.eup %2856  ;;  %v1843_v20 = vmul.f32 %v2855_v32, %v3632_v24  ;;  %v365_v24 = vld [vmem:[%s3772_s4 + $0x28] sm:$0xff] }
 0x57a   : > { %2717 = vmatpush3.msra.mxu0 %v1851_v8  ;;  %v1842_v36 = vmul.f32 %v2857_v34, %v3636_v25  ;;  %v1958_v39 = vmul.f32 %v2703_v33, %v365_v24 }
 0x57b   : > { %2718 = vmatprep.subr.mxu0 %v1850_v10 }
 0x57c   : > { %2719 = vmatpush3.msra.mxu0 %v1850_v10 }
 0x57d   : > { %2720 = vmatprep.subr.mxu0 %v1849_v12 }
 0x57e   : > { %2721 = vmatpush3.msra.mxu0 %v1849_v12 }
 0x57f   : > { %2722 = vmatprep.subr.mxu0 %v1848_v14 }
 0x580   : > { %2723 = vmatpush3.msra.mxu0 %v1848_v14 }
 0x581   : > { %2724 = vmatprep.subr.mxu0 %v1847_v54 }
 0x582   : > { %2725 = vmatpush3.msra.mxu0 %v1847_v54 }
 0x583   : > { %2726 = vmatprep.subr.mxu0 %v1846_v17 }
 0x584   : > { %2727 = vmatpush3.msra.mxu0 %v1846_v17 }
 0x585   : > { %2728 = vmatprep.subr.mxu0 %v1845_v55 }
 0x586   : > { %2729 = vmatpush3.msra.mxu0 %v1845_v55 }
 0x587   : > { %2730 = vmatprep.subr.mxu0 %v1844_v18 }
 0x588   : > { %2731 = vmatpush3.msra.mxu0 %v1844_v18 }
 0x589   : > { %2732 = vmatprep.subr.mxu0 %v1843_v20 }
 0x58a   : > { %2733 = vmatpush3.msra.mxu0 %v1843_v20 }
 0x58b   : > { %2734 = vmatprep.subr.mxu0 %v1842_v36 }
 0x58c   : > { %2735 = vmatpush3.msra.mxu0 %v1842_v36 }
 0x58d   : > { %2737 = vmatmul.mubr.f32.vlgmr.msra.gmra.mxu0 %v1956_v23 }
 0x58e   : > { %2739 = vmatprep.mubr.f32.mxu0 %v1957_v37 }
 0x591   : > { %2740 = vmatmul.mubr.f32.gmra.mxu0 %v1958_v39 }
 0x64d   : > { %v2738_v40 = vpop.f32.mrf.mxu0 }
 0x64f   : > { %v2025_v25 = vpop.f32.mrf.mxu0 }
 0x651   : > { %v2741_v41 = vpop.f32.mrf.mxu0 }
 0x652   : > { %2743 = vmatpush3.msra.mxu1 %v2741_v41 }
 0x653   : > { %v2035_v38 = vpop.f32.mrf.mxu0  ;;  %2744 = vmatprep.subr.mxu1 %v2920_v19 }
 0x654   : > { %2745 = vmatpush3.msra.mxu1 %v2035_v38 }
 0x655   : > { %2746 = vmatprep.subr.mxu1 %v2920_v19 }
 0x656   : > { %2747 = vmatpush3.msra.mxu1 %v2738_v40 }
 0x657   : > { %2748 = vmatprep.subr.mxu1 %v2920_v19 }
 0x658   : > { %2749 = vmatpush3.msra.mxu1 %v2025_v25 }
 0x659   : > { %2751 = vmatmul.mubr.msk.f32.vlgmr.msra.gmra.mxu1 %vm895_vm3, %v359_v42 }
 0x719   : > { %v2113_v48 = vpop.f32.mrf.mxu1 }
 0x71a   : > { %v2114_v49 = vadd.f32 %v2113_v48, %v342_v43 }
 0x71b   : > { %v2752_v19 = vpop.f32.mrf.mxu1 }
 0x71c   : > { %2118 = vst.msk [vmem:[%s242_s9] sm:$0xf] %vm2117_vm5, %v2114_v49 }
 0x71d   : > { %2871 = shalt.err (!%p2868_p3)
}
 0x71e   : > { %s2872_s18 = scalar_lea.hbm %s3733_s13, 64  ;;  %s2876_s26 = scalar_lea.hbm %s3774_s6, 128 }
 0x71f   : > { %p2873_p4 = scmp.ne.s32.totalorder %s3733_s13, %s2872_s18  ;;  %p2877_p9 = scmp.lt.s32.totalorder %s3733_s13, %s3774_s6 }
 0x720   : > { %p2878_p10 = scmp.lt.s32.totalorder %s2876_s26, %s2872_s18 }
 0x721   : > { %p2874_p7 = pnand %p2873_p4, %p2996_p5 }
 0x722   : > { %p2879_p11 = por %p2878_p10, %p2877_p9 }
 0x723   : > { %p2875_p8 = pneg %p2874_p7 }
 0x725   : > { %p2880_p12 = pnand %p2879_p11, %p2875_p8 }
 0x727   : > { %2883 = shalt.err (!%p2880_p12)
}
 0x728   : > { %2753 = dma.vmem_to_hbm [thread:$0]  (%p2996_p5), %s2134_s10, 64, %s3733_s13, %s2120_s14  }
 0x729 PF: > { %p2759_p13 = scmp.ge.s32.totalorder %s2918_s24, 2  ;;  %s2145_s9 = sand.u32 1, %s2906_s21  }
 0x72a   : > { %s2146_s11 = scalar_lea.sflag [#allocation3], %s2145_s9 }
 0x72b   : > { %p2756_p0 = pnand %p2759_p13, %p3000_p6 }
 0x72d   : > { %p2757_p1 = pneg %p2756_p0 }
 0x72f   : > { %2901 = dma.done.wait (%p2757_p1), %s2146_s11, 64  }
 0x730   : > { %2903 = vsyncadd (%p2757_p1), %s2146_s11, 4294967232  ;;  %p16_p2 = scmp.ge.s32.totalorder %s2983_s27, 4   ;;  %s3777_s21 = smov %s2910_s22 }
 0x731   : > { %s3778_s22 = smov %s2914_s23  ;;  %s3779_s23 = smov %s2994_s30 }
 0x732   : > { %s3780_s24 = smov %s2983_s27  ;;  %18 = sbr.rel (!%p16_p2) target bundleno = 3 (0x3), region = 79 }
 0x737   :  { %2151 = vsyncpa [#allocation3], 1 }
 0x738   :  { %2153 = vsyncpa [#allocation3 + $0x1], 1 }

</bundles_post_ra>
